<compile_context>
chip_gen: v6e
topology: v6e:2x2x1
jax: 0.10.0
libtpu: 0.0.40
codegen_flags: <defaults>
</compile_context>

<pallas_src>
import numpy as np
import jax
import jax.numpy as jnp
from jax.experimental import pallas as pl
from jax.experimental.pallas import tpu as pltpu

# conv geometry (fixed by the module): kernel=2, stride=2, padding=2
_K, _S, _P = 2, 2, 2


def _conv_size_out(size):
    return (size + 2 * _P - (_K - 1) - 1) // _S + 1


def _selection_matrices(h_in, w_in):
    """For each kernel offset k = kh*2+kw, a 0/1 matrix M_k of shape
    (h_in*w_in, h_out*w_out) such that for activations laid out
    (channels, spatial): (act @ M_k)[c, s_out] == padded_act[c, 2*ho+kh, 2*wo+kw]
    (zero where the tap lands in the zero padding). This turns the
    kernel=stride=2, padding=2 conv into 4 MXU matmuls inside the kernel."""
    h_out, w_out = _conv_size_out(h_in), _conv_size_out(w_in)
    mats = np.zeros((_K * _K, h_in * w_in, h_out * w_out), np.float32)
    for kh in range(_K):
        for kw in range(_K):
            k = kh * _K + kw
            for ho in range(h_out):
                r = _S * ho + kh - _P
                if not (0 <= r < h_in):
                    continue
                for wo in range(w_out):
                    c = _S * wo + kw - _P
                    if not (0 <= c < w_in):
                        continue
                    mats[k, r * w_in + c, ho * w_out + wo] = 1.0
    return mats


# ----------------------------------------------------------------------------
# Fused Pallas kernel: one grid step == one batch element
# ----------------------------------------------------------------------------

def _fused_forward_kernel(x_ref, q_ref, w1_ref, b1_ref, p_ref, w2_ref, b2_ref,
                          h1w_ref, h1b_ref, wa2_ref, ba2_ref, wv2_ref, bv2_ref,
                          o_ref):
    f32 = jnp.float32
    x = x_ref[0].astype(f32)                                   # (C_in, H*W)

    n_taps = q_ref.shape[0]                                    # 4 kernel offsets

    # ---- conv1 + ReLU: y1 (16, S1), channels x spatial -------------------
    acc1 = jnp.zeros((w1_ref.shape[1], q_ref.shape[2]), f32)
    for k in range(n_taps):
        taps = jnp.dot(x, q_ref[k], preferred_element_type=f32)          # (C_in, S1)
        acc1 = acc1 + jnp.dot(w1_ref[k], taps, preferred_element_type=f32)
    y1 = jnp.maximum(acc1 + b1_ref[...], 0.0)

    # ---- conv2 + ReLU: y2 (16, S2) ---------------------------------------
    acc2 = jnp.zeros((w2_ref.shape[1], p_ref.shape[2]), f32)
    for k in range(n_taps):
        taps = jnp.dot(y1, p_ref[k], preferred_element_type=f32)         # (16, S2)
        acc2 = acc2 + jnp.dot(w2_ref[k], taps, preferred_element_type=f32)
    y2 = jnp.maximum(acc2 + b2_ref[...], 0.0)

    # ---- heads, layer 1 (advantage & value hidden stacked on lanes) ------
    # Flatten order (c*S2 + s) is absorbed into h1w's per-channel blocks, so
    # the contraction is a sum over conv2 channels of tiny matmuls.
    n_c = h1w_ref.shape[0]
    h = jnp.zeros((1, h1w_ref.shape[2]), f32)
    for c in range(n_c):
        h = h + jnp.dot(y2[c:c + 1, :], h1w_ref[c], preferred_element_type=f32)
    h = jnp.maximum(h + h1b_ref[...], 0.0)                     # (1, 2*hid)

    hid = wa2_ref.shape[0]
    h_a = h[:, :hid]
    h_v = h[:, hid:]

    adv = jnp.dot(h_a, wa2_ref[...], preferred_element_type=f32) + ba2_ref[...]  # (1, A)
    val = jnp.dot(h_v, wv2_ref[...], preferred_element_type=f32) + bv2_ref[...]  # (1, 1)
    out = val + adv - jnp.mean(adv, axis=1, keepdims=True)     # dueling combine
    o_ref[...] = out.reshape(o_ref.shape)                      # (1, 1, A)


# ----------------------------------------------------------------------------
# One-time parameter repacking (PyTorch layout -> kernel-native layout)
# ----------------------------------------------------------------------------

def init_params(key, in_channel, h, w, num_action):
    convw = _conv_size_out(_conv_size_out(w))
    convh = _conv_size_out(_conv_size_out(h))
    lin_in = convw * convh * 16
    hid = 16
    ks = jax.random.split(key, 12)
    n = lambda k, shape, s=0.05: s * jax.random.normal(k, shape, jnp.float32)
    return {
        "conv1_w": n(ks[0], (16, in_channel, 2, 2)),
        "conv1_b": n(ks[1], (16,)),
        "conv2_w": n(ks[2], (16, 16, 2, 2)),
        "conv2_b": n(ks[3], (16,)),
        "adv1_w": n(ks[4], (hid, lin_in)),    # PyTorch Linear weight (out, in)
        "adv1_b": n(ks[5], (hid,)),
        "adv2_w": n(ks[6], (num_action, hid)),
        "adv2_b": n(ks[7], (num_action,)),
        "val1_w": n(ks[8], (hid, lin_in)),
        "val1_b": n(ks[9], (hid,)),
        "val2_w": n(ks[10], (1, hid)),
        "val2_b": n(ks[11], (1,)),
    }


def prepare_fused_params(params, h, w):
    """Repack weights once into DMA-ready tensors for the fused kernel.
    Nothing here depends on the batch size."""
    h1, w1 = _conv_size_out(h), _conv_size_out(w)
    h2, w2 = _conv_size_out(h1), _conv_size_out(w1)
    s2 = h2 * w2
    c2 = params["conv2_w"].shape[0]
    in_channel = params["conv1_w"].shape[1]
    hid = params["adv1_w"].shape[0]

    q = jnp.asarray(_selection_matrices(h, w))       # (4, H*W, S1)
    p = jnp.asarray(_selection_matrices(h1, w1))     # (4, S1, S2)

    # per-tap conv weights: w[k][o, c_in] = conv_w[o, c_in, kh, kw]
    w1k = jnp.transpose(params["conv1_w"], (2, 3, 0, 1)).reshape(4, -1, in_channel)
    w2k = jnp.transpose(params["conv2_w"], (2, 3, 0, 1)).reshape(4, c2, -1)

    # head layer 1: absorb PyTorch's NCHW flatten (index = c*S2 + s) into
    # per-conv2-channel blocks; advantage & value hidden units concatenated.
    ha = params["adv1_w"].reshape(hid, c2, s2).transpose(1, 2, 0)   # (c2, S2, hid)
    hv = params["val1_w"].reshape(hid, c2, s2).transpose(1, 2, 0)
    h1w = jnp.concatenate([ha, hv], axis=-1)                         # (c2, S2, 2*hid)
    h1b = jnp.concatenate([params["adv1_b"], params["val1_b"]]).reshape(1, 2 * hid)

    return {
        "q": q, "p": p,
        "w1k": w1k, "b1": params["conv1_b"].reshape(-1, 1),
        "w2k": w2k, "b2": params["conv2_b"].reshape(-1, 1),
        "h1w": h1w, "h1b": h1b,
        "wa2": params["adv2_w"].T, "ba2": params["adv2_b"].reshape(1, -1),
        "wv2": params["val2_w"].T, "bv2": params["val2_b"].reshape(1, 1),
    }


# ----------------------------------------------------------------------------
# Forward pass: single pallas_call, grid over the batch
# ----------------------------------------------------------------------------

def shared_discrete_net_forward(prep, x):
    B, C, H, W = x.shape
    A = prep["wa2"].shape[1]
    x_flat = x.reshape(B, C, H * W)   # metadata-only; the f32 cast is in-kernel

    def resident(arr):
        nd = arr.ndim
        return pl.BlockSpec(arr.shape, lambda b, _nd=nd: (0,) * _nd)

    const_names = ("q", "w1k", "b1", "p", "w2k", "b2",
                   "h1w", "h1b", "wa2", "ba2", "wv2", "bv2")
    consts = [prep[k] for k in const_names]

    out = pl.pallas_call(
        _fused_forward_kernel,
        out_shape=jax.ShapeDtypeStruct((B, 1, A), jnp.float32),
        grid=(B,),
        in_specs=[pl.BlockSpec((1, C, H * W), lambda b: (b, 0, 0))]
                 + [resident(a) for a in consts],
        out_specs=pl.BlockSpec((1, 1, A), lambda b: (b, 0, 0)),
        compiler_params=pltpu.CompilerParams(
            dimension_semantics=("parallel",)),
    )(x_flat, *consts)
    return out.reshape(B, A)


# ----------------------------------------------------------------------------
# Pure-JAX reference (for correctness) + demo
# ----------------------------------------------------------------------------

def _reference_forward(params, x):
    x = x.astype(jnp.float32)
    dn = ("NCHW", "OIHW", "NCHW")
    y = jax.lax.conv_general_dilated(x, params["conv1_w"], (2, 2),
                                     ((2, 2), (2, 2)), dimension_numbers=dn)
    y = jnp.maximum(y + params["conv1_b"][None, :, None, None], 0.0)
    y = jax.lax.conv_general_dilated(y, params["conv2_w"], (2, 2),
                                     ((2, 2), (2, 2)), dimension_numbers=dn)
    y = jnp.maximum(y + params["conv2_b"][None, :, None, None], 0.0)
    feat = y.reshape(y.shape[0], -1)
    h_a = jnp.maximum(feat @ params["adv1_w"].T + params["adv1_b"], 0.0)
    adv = h_a @ params["adv2_w"].T + params["adv2_b"]
    h_v = jnp.maximum(feat @ params["val1_w"].T + params["val1_b"], 0.0)
    val = h_v @ params["val2_w"].T + params["val2_b"]
    return val + adv - adv.mean(axis=1, keepdims=True)


if __name__ == "__main__":
    in_channel, h, w, num_action, batch = 4, 16, 16, 4, 2

    key = jax.random.PRNGKey(0)
    k_params, k_x = jax.random.split(key)
    params = init_params(k_params, in_channel, h, w, num_action)
    prep = prepare_fused_params(params, h, w)      # one-time weight repack

    # integer "board" input, cast to f32 inside the kernel (mirrors x.to(float32))
    x = jax.random.randint(k_x, (batch, in_channel, h, w), 0, 12, dtype=jnp.int32)

    fwd = jax.jit(shared_discrete_net_forward)
    out = jax.block_until_ready(fwd(prep, x))
    assert out.shape == (batch, num_action), out.shape
    assert out.dtype == jnp.float32

    ref = jax.block_until_ready(_reference_forward(params, x))
    np.testing.assert_allclose(np.asarray(out), np.asarray(ref), rtol=2e-2, atol=2e-2)

    print("KERNEL_OK")
</pallas_src>

<mosaic_0001>
module attributes {stable_mosaic.version = 11 : i64} {
  func.func @_fused_forward_kernel(%arg0: i32, %arg1: memref<1x4x256xi32, #tpu.memory_space<vmem>>, %arg2: memref<4x256x100xf32, #tpu.memory_space<vmem>>, %arg3: memref<4x16x4xf32, #tpu.memory_space<vmem>>, %arg4: memref<16x1xf32, #tpu.memory_space<vmem>>, %arg5: memref<4x100x49xf32, #tpu.memory_space<vmem>>, %arg6: memref<4x16x16xf32, #tpu.memory_space<vmem>>, %arg7: memref<16x1xf32, #tpu.memory_space<vmem>>, %arg8: memref<16x49x32xf32, #tpu.memory_space<vmem>>, %arg9: memref<1x32xf32, #tpu.memory_space<vmem>>, %arg10: memref<16x4xf32, #tpu.memory_space<vmem>>, %arg11: memref<1x4xf32, #tpu.memory_space<vmem>>, %arg12: memref<16x1xf32, #tpu.memory_space<vmem>>, %arg13: memref<1x1xf32, #tpu.memory_space<vmem>>, %arg14: memref<1x1x4xf32, #tpu.memory_space<vmem>>) attributes {dimension_semantics = [#tpu.dimension_semantics<parallel>], iteration_bounds = array<i64: 2>, scalar_prefetch = 0 : i64, scratch_operands = 0 : i64, tpu.core_type = #tpu.core_type<tc>, window_params = [{transform_indices = @transform_0, window_bounds = array<i64: 1, 4, 256>}, {pipeline_mode = #tpu.pipeline_mode<synchronous>, transform_indices = @transform_1, window_bounds = array<i64: 4, 256, 100>}, {pipeline_mode = #tpu.pipeline_mode<synchronous>, transform_indices = @transform_2, window_bounds = array<i64: 4, 16, 4>}, {pipeline_mode = #tpu.pipeline_mode<synchronous>, transform_indices = @transform_3, window_bounds = array<i64: 16, 1>}, {pipeline_mode = #tpu.pipeline_mode<synchronous>, transform_indices = @transform_4, window_bounds = array<i64: 4, 100, 49>}, {pipeline_mode = #tpu.pipeline_mode<synchronous>, transform_indices = @transform_5, window_bounds = array<i64: 4, 16, 16>}, {pipeline_mode = #tpu.pipeline_mode<synchronous>, transform_indices = @transform_6, window_bounds = array<i64: 16, 1>}, {pipeline_mode = #tpu.pipeline_mode<synchronous>, transform_indices = @transform_7, window_bounds = array<i64: 16, 49, 32>}, {pipeline_mode = #tpu.pipeline_mode<synchronous>, transform_indices = @transform_8, window_bounds = array<i64: 1, 32>}, {pipeline_mode = #tpu.pipeline_mode<synchronous>, transform_indices = @transform_9, window_bounds = array<i64: 16, 4>}, {pipeline_mode = #tpu.pipeline_mode<synchronous>, transform_indices = @transform_10, window_bounds = array<i64: 1, 4>}, {pipeline_mode = #tpu.pipeline_mode<synchronous>, transform_indices = @transform_11, window_bounds = array<i64: 16, 1>}, {pipeline_mode = #tpu.pipeline_mode<synchronous>, transform_indices = @transform_12, window_bounds = array<i64: 1, 1>}, {transform_indices = @transform_13, window_bounds = array<i64: 1, 1, 4>}]} {
    %c0 = arith.constant 0 : index
    %c0_0 = arith.constant 0 : index
    %c0_1 = arith.constant 0 : index
    %0 = vector.load %arg1[%c0, %c0_0, %c0_1] : memref<1x4x256xi32, #tpu.memory_space<vmem>>, vector<1x4x256xi32>
    %1 = vector.shape_cast %0 : vector<1x4x256xi32> to vector<4x256xi32>
    %2 = arith.sitofp %1 : vector<4x256xi32> to vector<4x256xf32>
    %cst = arith.constant 0.000000e+00 : f32
    %3 = vector.broadcast %cst : f32 to vector<16x100xf32>
    %c0_2 = arith.constant 0 : index
    %c0_3 = arith.constant 0 : index
    %c0_4 = arith.constant 0 : index
    %4 = vector.load %arg2[%c0_2, %c0_3, %c0_4] : memref<4x256x100xf32, #tpu.memory_space<vmem>>, vector<1x256x100xf32>
    %5 = vector.shape_cast %4 : vector<1x256x100xf32> to vector<256x100xf32>
    %cst_5 = arith.constant dense<0.000000e+00> : vector<4x100xf32>
    %6 = tpu.matmul %2, %5, %cst_5 {dimension_numbers = #tpu.dot_dimension_numbers<[1], [0], [0], [1], [0, 0, 1, 1], [], []>} : vector<4x256xf32>, vector<256x100xf32>, vector<4x100xf32> -> vector<4x100xf32>
    %c0_6 = arith.constant 0 : index
    %c0_7 = arith.constant 0 : index
    %c0_8 = arith.constant 0 : index
    %7 = vector.load %arg3[%c0_6, %c0_7, %c0_8] : memref<4x16x4xf32, #tpu.memory_space<vmem>>, vector<1x16x4xf32>
    %8 = vector.shape_cast %7 : vector<1x16x4xf32> to vector<16x4xf32>
    %cst_9 = arith.constant dense<0.000000e+00> : vector<16x100xf32>
    %9 = tpu.matmul %8, %6, %cst_9 {dimension_numbers = #tpu.dot_dimension_numbers<[1], [0], [0], [1], [0, 0, 1, 1], [], []>} : vector<16x4xf32>, vector<4x100xf32>, vector<16x100xf32> -> vector<16x100xf32>
    %10 = arith.addf %3, %9 : vector<16x100xf32>
    %c1 = arith.constant 1 : index
    %c0_10 = arith.constant 0 : index
    %c0_11 = arith.constant 0 : index
    %11 = vector.load %arg2[%c1, %c0_10, %c0_11] : memref<4x256x100xf32, #tpu.memory_space<vmem>>, vector<1x256x100xf32>
    %12 = vector.shape_cast %11 : vector<1x256x100xf32> to vector<256x100xf32>
    %cst_12 = arith.constant dense<0.000000e+00> : vector<4x100xf32>
    %13 = tpu.matmul %2, %12, %cst_12 {dimension_numbers = #tpu.dot_dimension_numbers<[1], [0], [0], [1], [0, 0, 1, 1], [], []>} : vector<4x256xf32>, vector<256x100xf32>, vector<4x100xf32> -> vector<4x100xf32>
    %c1_13 = arith.constant 1 : index
    %c0_14 = arith.constant 0 : index
    %c0_15 = arith.constant 0 : index
    %14 = vector.load %arg3[%c1_13, %c0_14, %c0_15] : memref<4x16x4xf32, #tpu.memory_space<vmem>>, vector<1x16x4xf32>
    %15 = vector.shape_cast %14 : vector<1x16x4xf32> to vector<16x4xf32>
    %cst_16 = arith.constant dense<0.000000e+00> : vector<16x100xf32>
    %16 = tpu.matmul %15, %13, %cst_16 {dimension_numbers = #tpu.dot_dimension_numbers<[1], [0], [0], [1], [0, 0, 1, 1], [], []>} : vector<16x4xf32>, vector<4x100xf32>, vector<16x100xf32> -> vector<16x100xf32>
    %17 = arith.addf %10, %16 : vector<16x100xf32>
    %c2 = arith.constant 2 : index
    %c0_17 = arith.constant 0 : index
    %c0_18 = arith.constant 0 : index
    %18 = vector.load %arg2[%c2, %c0_17, %c0_18] : memref<4x256x100xf32, #tpu.memory_space<vmem>>, vector<1x256x100xf32>
    %19 = vector.shape_cast %18 : vector<1x256x100xf32> to vector<256x100xf32>
    %cst_19 = arith.constant dense<0.000000e+00> : vector<4x100xf32>
    %20 = tpu.matmul %2, %19, %cst_19 {dimension_numbers = #tpu.dot_dimension_numbers<[1], [0], [0], [1], [0, 0, 1, 1], [], []>} : vector<4x256xf32>, vector<256x100xf32>, vector<4x100xf32> -> vector<4x100xf32>
    %c2_20 = arith.constant 2 : index
    %c0_21 = arith.constant 0 : index
    %c0_22 = arith.constant 0 : index
    %21 = vector.load %arg3[%c2_20, %c0_21, %c0_22] : memref<4x16x4xf32, #tpu.memory_space<vmem>>, vector<1x16x4xf32>
    %22 = vector.shape_cast %21 : vector<1x16x4xf32> to vector<16x4xf32>
    %cst_23 = arith.constant dense<0.000000e+00> : vector<16x100xf32>
    %23 = tpu.matmul %22, %20, %cst_23 {dimension_numbers = #tpu.dot_dimension_numbers<[1], [0], [0], [1], [0, 0, 1, 1], [], []>} : vector<16x4xf32>, vector<4x100xf32>, vector<16x100xf32> -> vector<16x100xf32>
    %24 = arith.addf %17, %23 : vector<16x100xf32>
    %c3 = arith.constant 3 : index
    %c0_24 = arith.constant 0 : index
    %c0_25 = arith.constant 0 : index
    %25 = vector.load %arg2[%c3, %c0_24, %c0_25] : memref<4x256x100xf32, #tpu.memory_space<vmem>>, vector<1x256x100xf32>
    %26 = vector.shape_cast %25 : vector<1x256x100xf32> to vector<256x100xf32>
    %cst_26 = arith.constant dense<0.000000e+00> : vector<4x100xf32>
    %27 = tpu.matmul %2, %26, %cst_26 {dimension_numbers = #tpu.dot_dimension_numbers<[1], [0], [0], [1], [0, 0, 1, 1], [], []>} : vector<4x256xf32>, vector<256x100xf32>, vector<4x100xf32> -> vector<4x100xf32>
    %c3_27 = arith.constant 3 : index
    %c0_28 = arith.constant 0 : index
    %c0_29 = arith.constant 0 : index
    %28 = vector.load %arg3[%c3_27, %c0_28, %c0_29] : memref<4x16x4xf32, #tpu.memory_space<vmem>>, vector<1x16x4xf32>
    %29 = vector.shape_cast %28 : vector<1x16x4xf32> to vector<16x4xf32>
    %cst_30 = arith.constant dense<0.000000e+00> : vector<16x100xf32>
    %30 = tpu.matmul %29, %27, %cst_30 {dimension_numbers = #tpu.dot_dimension_numbers<[1], [0], [0], [1], [0, 0, 1, 1], [], []>} : vector<16x4xf32>, vector<4x100xf32>, vector<16x100xf32> -> vector<16x100xf32>
    %31 = arith.addf %24, %30 : vector<16x100xf32>
    %c0_31 = arith.constant 0 : index
    %c0_32 = arith.constant 0 : index
    %32 = vector.load %arg4[%c0_31, %c0_32] : memref<16x1xf32, #tpu.memory_space<vmem>>, vector<16x1xf32>
    %33 = vector.broadcast %32 : vector<16x1xf32> to vector<16x100xf32>
    %34 = arith.addf %31, %33 : vector<16x100xf32>
    %cst_33 = arith.constant 0.000000e+00 : f32
    %35 = vector.broadcast %cst_33 : f32 to vector<16x100xf32>
    %36 = arith.maximumf %34, %35 : vector<16x100xf32>
    %cst_34 = arith.constant 0.000000e+00 : f32
    %37 = vector.broadcast %cst_34 : f32 to vector<16x49xf32>
    %c0_35 = arith.constant 0 : index
    %c0_36 = arith.constant 0 : index
    %c0_37 = arith.constant 0 : index
    %38 = vector.load %arg5[%c0_35, %c0_36, %c0_37] : memref<4x100x49xf32, #tpu.memory_space<vmem>>, vector<1x100x49xf32>
    %39 = vector.shape_cast %38 : vector<1x100x49xf32> to vector<100x49xf32>
    %cst_38 = arith.constant dense<0.000000e+00> : vector<16x49xf32>
    %40 = tpu.matmul %36, %39, %cst_38 {dimension_numbers = #tpu.dot_dimension_numbers<[1], [0], [0], [1], [0, 0, 1, 1], [], []>} : vector<16x100xf32>, vector<100x49xf32>, vector<16x49xf32> -> vector<16x49xf32>
    %c0_39 = arith.constant 0 : index
    %c0_40 = arith.constant 0 : index
    %c0_41 = arith.constant 0 : index
    %41 = vector.load %arg6[%c0_39, %c0_40, %c0_41] : memref<4x16x16xf32, #tpu.memory_space<vmem>>, vector<1x16x16xf32>
    %42 = vector.shape_cast %41 : vector<1x16x16xf32> to vector<16x16xf32>
    %cst_42 = arith.constant dense<0.000000e+00> : vector<16x49xf32>
    %43 = tpu.matmul %42, %40, %cst_42 {dimension_numbers = #tpu.dot_dimension_numbers<[1], [0], [0], [1], [0, 0, 1, 1], [], []>} : vector<16x16xf32>, vector<16x49xf32>, vector<16x49xf32> -> vector<16x49xf32>
    %44 = arith.addf %37, %43 : vector<16x49xf32>
    %c1_43 = arith.constant 1 : index
    %c0_44 = arith.constant 0 : index
    %c0_45 = arith.constant 0 : index
    %45 = vector.load %arg5[%c1_43, %c0_44, %c0_45] : memref<4x100x49xf32, #tpu.memory_space<vmem>>, vector<1x100x49xf32>
    %46 = vector.shape_cast %45 : vector<1x100x49xf32> to vector<100x49xf32>
    %cst_46 = arith.constant dense<0.000000e+00> : vector<16x49xf32>
    %47 = tpu.matmul %36, %46, %cst_46 {dimension_numbers = #tpu.dot_dimension_numbers<[1], [0], [0], [1], [0, 0, 1, 1], [], []>} : vector<16x100xf32>, vector<100x49xf32>, vector<16x49xf32> -> vector<16x49xf32>
    %c1_47 = arith.constant 1 : index
    %c0_48 = arith.constant 0 : index
    %c0_49 = arith.constant 0 : index
    %48 = vector.load %arg6[%c1_47, %c0_48, %c0_49] : memref<4x16x16xf32, #tpu.memory_space<vmem>>, vector<1x16x16xf32>
    %49 = vector.shape_cast %48 : vector<1x16x16xf32> to vector<16x16xf32>
    %cst_50 = arith.constant dense<0.000000e+00> : vector<16x49xf32>
    %50 = tpu.matmul %49, %47, %cst_50 {dimension_numbers = #tpu.dot_dimension_numbers<[1], [0], [0], [1], [0, 0, 1, 1], [], []>} : vector<16x16xf32>, vector<16x49xf32>, vector<16x49xf32> -> vector<16x49xf32>
    %51 = arith.addf %44, %50 : vector<16x49xf32>
    %c2_51 = arith.constant 2 : index
    %c0_52 = arith.constant 0 : index
    %c0_53 = arith.constant 0 : index
    %52 = vector.load %arg5[%c2_51, %c0_52, %c0_53] : memref<4x100x49xf32, #tpu.memory_space<vmem>>, vector<1x100x49xf32>
    %53 = vector.shape_cast %52 : vector<1x100x49xf32> to vector<100x49xf32>
    %cst_54 = arith.constant dense<0.000000e+00> : vector<16x49xf32>
    %54 = tpu.matmul %36, %53, %cst_54 {dimension_numbers = #tpu.dot_dimension_numbers<[1], [0], [0], [1], [0, 0, 1, 1], [], []>} : vector<16x100xf32>, vector<100x49xf32>, vector<16x49xf32> -> vector<16x49xf32>
    %c2_55 = arith.constant 2 : index
    %c0_56 = arith.constant 0 : index
    %c0_57 = arith.constant 0 : index
    %55 = vector.load %arg6[%c2_55, %c0_56, %c0_57] : memref<4x16x16xf32, #tpu.memory_space<vmem>>, vector<1x16x16xf32>
    %56 = vector.shape_cast %55 : vector<1x16x16xf32> to vector<16x16xf32>
    %cst_58 = arith.constant dense<0.000000e+00> : vector<16x49xf32>
    %57 = tpu.matmul %56, %54, %cst_58 {dimension_numbers = #tpu.dot_dimension_numbers<[1], [0], [0], [1], [0, 0, 1, 1], [], []>} : vector<16x16xf32>, vector<16x49xf32>, vector<16x49xf32> -> vector<16x49xf32>
    %58 = arith.addf %51, %57 : vector<16x49xf32>
    %c3_59 = arith.constant 3 : index
    %c0_60 = arith.constant 0 : index
    %c0_61 = arith.constant 0 : index
    %59 = vector.load %arg5[%c3_59, %c0_60, %c0_61] : memref<4x100x49xf32, #tpu.memory_space<vmem>>, vector<1x100x49xf32>
    %60 = vector.shape_cast %59 : vector<1x100x49xf32> to vector<100x49xf32>
    %cst_62 = arith.constant dense<0.000000e+00> : vector<16x49xf32>
    %61 = tpu.matmul %36, %60, %cst_62 {dimension_numbers = #tpu.dot_dimension_numbers<[1], [0], [0], [1], [0, 0, 1, 1], [], []>} : vector<16x100xf32>, vector<100x49xf32>, vector<16x49xf32> -> vector<16x49xf32>
    %c3_63 = arith.constant 3 : index
    %c0_64 = arith.constant 0 : index
    %c0_65 = arith.constant 0 : index
    %62 = vector.load %arg6[%c3_63, %c0_64, %c0_65] : memref<4x16x16xf32, #tpu.memory_space<vmem>>, vector<1x16x16xf32>
    %63 = vector.shape_cast %62 : vector<1x16x16xf32> to vector<16x16xf32>
    %cst_66 = arith.constant dense<0.000000e+00> : vector<16x49xf32>
    %64 = tpu.matmul %63, %61, %cst_66 {dimension_numbers = #tpu.dot_dimension_numbers<[1], [0], [0], [1], [0, 0, 1, 1], [], []>} : vector<16x16xf32>, vector<16x49xf32>, vector<16x49xf32> -> vector<16x49xf32>
    %65 = arith.addf %58, %64 : vector<16x49xf32>
    %c0_67 = arith.constant 0 : index
    %c0_68 = arith.constant 0 : index
    %66 = vector.load %arg7[%c0_67, %c0_68] : memref<16x1xf32, #tpu.memory_space<vmem>>, vector<16x1xf32>
    %67 = vector.broadcast %66 : vector<16x1xf32> to vector<16x49xf32>
    %68 = arith.addf %65, %67 : vector<16x49xf32>
    %cst_69 = arith.constant 0.000000e+00 : f32
    %69 = vector.broadcast %cst_69 : f32 to vector<16x49xf32>
    %70 = arith.maximumf %68, %69 : vector<16x49xf32>
    %cst_70 = arith.constant 0.000000e+00 : f32
    %71 = vector.broadcast %cst_70 : f32 to vector<1x32xf32>
    %72 = vector.extract_strided_slice %70 {offsets = [0, 0], sizes = [1, 49], strides = [1, 1]} : vector<16x49xf32> to vector<1x49xf32>
    %c0_71 = arith.constant 0 : index
    %c0_72 = arith.constant 0 : index
    %c0_73 = arith.constant 0 : index
    %73 = vector.load %arg8[%c0_71, %c0_72, %c0_73] : memref<16x49x32xf32, #tpu.memory_space<vmem>>, vector<1x49x32xf32>
    %74 = vector.shape_cast %73 : vector<1x49x32xf32> to vector<49x32xf32>
    %cst_74 = arith.constant dense<0.000000e+00> : vector<1x32xf32>
    %75 = tpu.matmul %72, %74, %cst_74 {dimension_numbers = #tpu.dot_dimension_numbers<[1], [0], [0], [1], [0, 0, 1, 1], [], []>} : vector<1x49xf32>, vector<49x32xf32>, vector<1x32xf32> -> vector<1x32xf32>
    %76 = arith.addf %71, %75 : vector<1x32xf32>
    %77 = vector.extract_strided_slice %70 {offsets = [1, 0], sizes = [1, 49], strides = [1, 1]} : vector<16x49xf32> to vector<1x49xf32>
    %c1_75 = arith.constant 1 : index
    %c0_76 = arith.constant 0 : index
    %c0_77 = arith.constant 0 : index
    %78 = vector.load %arg8[%c1_75, %c0_76, %c0_77] : memref<16x49x32xf32, #tpu.memory_space<vmem>>, vector<1x49x32xf32>
    %79 = vector.shape_cast %78 : vector<1x49x32xf32> to vector<49x32xf32>
    %cst_78 = arith.constant dense<0.000000e+00> : vector<1x32xf32>
    %80 = tpu.matmul %77, %79, %cst_78 {dimension_numbers = #tpu.dot_dimension_numbers<[1], [0], [0], [1], [0, 0, 1, 1], [], []>} : vector<1x49xf32>, vector<49x32xf32>, vector<1x32xf32> -> vector<1x32xf32>
    %81 = arith.addf %76, %80 : vector<1x32xf32>
    %82 = vector.extract_strided_slice %70 {offsets = [2, 0], sizes = [1, 49], strides = [1, 1]} : vector<16x49xf32> to vector<1x49xf32>
    %c2_79 = arith.constant 2 : index
    %c0_80 = arith.constant 0 : index
    %c0_81 = arith.constant 0 : index
    %83 = vector.load %arg8[%c2_79, %c0_80, %c0_81] : memref<16x49x32xf32, #tpu.memory_space<vmem>>, vector<1x49x32xf32>
    %84 = vector.shape_cast %83 : vector<1x49x32xf32> to vector<49x32xf32>
    %cst_82 = arith.constant dense<0.000000e+00> : vector<1x32xf32>
    %85 = tpu.matmul %82, %84, %cst_82 {dimension_numbers = #tpu.dot_dimension_numbers<[1], [0], [0], [1], [0, 0, 1, 1], [], []>} : vector<1x49xf32>, vector<49x32xf32>, vector<1x32xf32> -> vector<1x32xf32>
    %86 = arith.addf %81, %85 : vector<1x32xf32>
    %87 = vector.extract_strided_slice %70 {offsets = [3, 0], sizes = [1, 49], strides = [1, 1]} : vector<16x49xf32> to vector<1x49xf32>
    %c3_83 = arith.constant 3 : index
    %c0_84 = arith.constant 0 : index
    %c0_85 = arith.constant 0 : index
    %88 = vector.load %arg8[%c3_83, %c0_84, %c0_85] : memref<16x49x32xf32, #tpu.memory_space<vmem>>, vector<1x49x32xf32>
    %89 = vector.shape_cast %88 : vector<1x49x32xf32> to vector<49x32xf32>
    %cst_86 = arith.constant dense<0.000000e+00> : vector<1x32xf32>
    %90 = tpu.matmul %87, %89, %cst_86 {dimension_numbers = #tpu.dot_dimension_numbers<[1], [0], [0], [1], [0, 0, 1, 1], [], []>} : vector<1x49xf32>, vector<49x32xf32>, vector<1x32xf32> -> vector<1x32xf32>
    %91 = arith.addf %86, %90 : vector<1x32xf32>
    %92 = vector.extract_strided_slice %70 {offsets = [4, 0], sizes = [1, 49], strides = [1, 1]} : vector<16x49xf32> to vector<1x49xf32>
    %c4 = arith.constant 4 : index
    %c0_87 = arith.constant 0 : index
    %c0_88 = arith.constant 0 : index
    %93 = vector.load %arg8[%c4, %c0_87, %c0_88] : memref<16x49x32xf32, #tpu.memory_space<vmem>>, vector<1x49x32xf32>
    %94 = vector.shape_cast %93 : vector<1x49x32xf32> to vector<49x32xf32>
    %cst_89 = arith.constant dense<0.000000e+00> : vector<1x32xf32>
    %95 = tpu.matmul %92, %94, %cst_89 {dimension_numbers = #tpu.dot_dimension_numbers<[1], [0], [0], [1], [0, 0, 1, 1], [], []>} : vector<1x49xf32>, vector<49x32xf32>, vector<1x32xf32> -> vector<1x32xf32>
    %96 = arith.addf %91, %95 : vector<1x32xf32>
    %97 = vector.extract_strided_slice %70 {offsets = [5, 0], sizes = [1, 49], strides = [1, 1]} : vector<16x49xf32> to vector<1x49xf32>
    %c5 = arith.constant 5 : index
    %c0_90 = arith.constant 0 : index
    %c0_91 = arith.constant 0 : index
    %98 = vector.load %arg8[%c5, %c0_90, %c0_91] : memref<16x49x32xf32, #tpu.memory_space<vmem>>, vector<1x49x32xf32>
    %99 = vector.shape_cast %98 : vector<1x49x32xf32> to vector<49x32xf32>
    %cst_92 = arith.constant dense<0.000000e+00> : vector<1x32xf32>
    %100 = tpu.matmul %97, %99, %cst_92 {dimension_numbers = #tpu.dot_dimension_numbers<[1], [0], [0], [1], [0, 0, 1, 1], [], []>} : vector<1x49xf32>, vector<49x32xf32>, vector<1x32xf32> -> vector<1x32xf32>
    %101 = arith.addf %96, %100 : vector<1x32xf32>
    %102 = vector.extract_strided_slice %70 {offsets = [6, 0], sizes = [1, 49], strides = [1, 1]} : vector<16x49xf32> to vector<1x49xf32>
    %c6 = arith.constant 6 : index
    %c0_93 = arith.constant 0 : index
    %c0_94 = arith.constant 0 : index
    %103 = vector.load %arg8[%c6, %c0_93, %c0_94] : memref<16x49x32xf32, #tpu.memory_space<vmem>>, vector<1x49x32xf32>
    %104 = vector.shape_cast %103 : vector<1x49x32xf32> to vector<49x32xf32>
    %cst_95 = arith.constant dense<0.000000e+00> : vector<1x32xf32>
    %105 = tpu.matmul %102, %104, %cst_95 {dimension_numbers = #tpu.dot_dimension_numbers<[1], [0], [0], [1], [0, 0, 1, 1], [], []>} : vector<1x49xf32>, vector<49x32xf32>, vector<1x32xf32> -> vector<1x32xf32>
    %106 = arith.addf %101, %105 : vector<1x32xf32>
    %107 = vector.extract_strided_slice %70 {offsets = [7, 0], sizes = [1, 49], strides = [1, 1]} : vector<16x49xf32> to vector<1x49xf32>
    %c7 = arith.constant 7 : index
    %c0_96 = arith.constant 0 : index
    %c0_97 = arith.constant 0 : index
    %108 = vector.load %arg8[%c7, %c0_96, %c0_97] : memref<16x49x32xf32, #tpu.memory_space<vmem>>, vector<1x49x32xf32>
    %109 = vector.shape_cast %108 : vector<1x49x32xf32> to vector<49x32xf32>
    %cst_98 = arith.constant dense<0.000000e+00> : vector<1x32xf32>
    %110 = tpu.matmul %107, %109, %cst_98 {dimension_numbers = #tpu.dot_dimension_numbers<[1], [0], [0], [1], [0, 0, 1, 1], [], []>} : vector<1x49xf32>, vector<49x32xf32>, vector<1x32xf32> -> vector<1x32xf32>
    %111 = arith.addf %106, %110 : vector<1x32xf32>
    %112 = vector.extract_strided_slice %70 {offsets = [8, 0], sizes = [1, 49], strides = [1, 1]} : vector<16x49xf32> to vector<1x49xf32>
    %c8 = arith.constant 8 : index
    %c0_99 = arith.constant 0 : index
    %c0_100 = arith.constant 0 : index
    %113 = vector.load %arg8[%c8, %c0_99, %c0_100] : memref<16x49x32xf32, #tpu.memory_space<vmem>>, vector<1x49x32xf32>
    %114 = vector.shape_cast %113 : vector<1x49x32xf32> to vector<49x32xf32>
    %cst_101 = arith.constant dense<0.000000e+00> : vector<1x32xf32>
    %115 = tpu.matmul %112, %114, %cst_101 {dimension_numbers = #tpu.dot_dimension_numbers<[1], [0], [0], [1], [0, 0, 1, 1], [], []>} : vector<1x49xf32>, vector<49x32xf32>, vector<1x32xf32> -> vector<1x32xf32>
    %116 = arith.addf %111, %115 : vector<1x32xf32>
    %117 = vector.extract_strided_slice %70 {offsets = [9, 0], sizes = [1, 49], strides = [1, 1]} : vector<16x49xf32> to vector<1x49xf32>
    %c9 = arith.constant 9 : index
    %c0_102 = arith.constant 0 : index
    %c0_103 = arith.constant 0 : index
    %118 = vector.load %arg8[%c9, %c0_102, %c0_103] : memref<16x49x32xf32, #tpu.memory_space<vmem>>, vector<1x49x32xf32>
    %119 = vector.shape_cast %118 : vector<1x49x32xf32> to vector<49x32xf32>
    %cst_104 = arith.constant dense<0.000000e+00> : vector<1x32xf32>
    %120 = tpu.matmul %117, %119, %cst_104 {dimension_numbers = #tpu.dot_dimension_numbers<[1], [0], [0], [1], [0, 0, 1, 1], [], []>} : vector<1x49xf32>, vector<49x32xf32>, vector<1x32xf32> -> vector<1x32xf32>
    %121 = arith.addf %116, %120 : vector<1x32xf32>
    %122 = vector.extract_strided_slice %70 {offsets = [10, 0], sizes = [1, 49], strides = [1, 1]} : vector<16x49xf32> to vector<1x49xf32>
    %c10 = arith.constant 10 : index
    %c0_105 = arith.constant 0 : index
    %c0_106 = arith.constant 0 : index
    %123 = vector.load %arg8[%c10, %c0_105, %c0_106] : memref<16x49x32xf32, #tpu.memory_space<vmem>>, vector<1x49x32xf32>
    %124 = vector.shape_cast %123 : vector<1x49x32xf32> to vector<49x32xf32>
    %cst_107 = arith.constant dense<0.000000e+00> : vector<1x32xf32>
    %125 = tpu.matmul %122, %124, %cst_107 {dimension_numbers = #tpu.dot_dimension_numbers<[1], [0], [0], [1], [0, 0, 1, 1], [], []>} : vector<1x49xf32>, vector<49x32xf32>, vector<1x32xf32> -> vector<1x32xf32>
    %126 = arith.addf %121, %125 : vector<1x32xf32>
    %127 = vector.extract_strided_slice %70 {offsets = [11, 0], sizes = [1, 49], strides = [1, 1]} : vector<16x49xf32> to vector<1x49xf32>
    %c11 = arith.constant 11 : index
    %c0_108 = arith.constant 0 : index
    %c0_109 = arith.constant 0 : index
    %128 = vector.load %arg8[%c11, %c0_108, %c0_109] : memref<16x49x32xf32, #tpu.memory_space<vmem>>, vector<1x49x32xf32>
    %129 = vector.shape_cast %128 : vector<1x49x32xf32> to vector<49x32xf32>
    %cst_110 = arith.constant dense<0.000000e+00> : vector<1x32xf32>
    %130 = tpu.matmul %127, %129, %cst_110 {dimension_numbers = #tpu.dot_dimension_numbers<[1], [0], [0], [1], [0, 0, 1, 1], [], []>} : vector<1x49xf32>, vector<49x32xf32>, vector<1x32xf32> -> vector<1x32xf32>
    %131 = arith.addf %126, %130 : vector<1x32xf32>
    %132 = vector.extract_strided_slice %70 {offsets = [12, 0], sizes = [1, 49], strides = [1, 1]} : vector<16x49xf32> to vector<1x49xf32>
    %c12 = arith.constant 12 : index
    %c0_111 = arith.constant 0 : index
    %c0_112 = arith.constant 0 : index
    %133 = vector.load %arg8[%c12, %c0_111, %c0_112] : memref<16x49x32xf32, #tpu.memory_space<vmem>>, vector<1x49x32xf32>
    %134 = vector.shape_cast %133 : vector<1x49x32xf32> to vector<49x32xf32>
    %cst_113 = arith.constant dense<0.000000e+00> : vector<1x32xf32>
    %135 = tpu.matmul %132, %134, %cst_113 {dimension_numbers = #tpu.dot_dimension_numbers<[1], [0], [0], [1], [0, 0, 1, 1], [], []>} : vector<1x49xf32>, vector<49x32xf32>, vector<1x32xf32> -> vector<1x32xf32>
    %136 = arith.addf %131, %135 : vector<1x32xf32>
    %137 = vector.extract_strided_slice %70 {offsets = [13, 0], sizes = [1, 49], strides = [1, 1]} : vector<16x49xf32> to vector<1x49xf32>
    %c13 = arith.constant 13 : index
    %c0_114 = arith.constant 0 : index
    %c0_115 = arith.constant 0 : index
    %138 = vector.load %arg8[%c13, %c0_114, %c0_115] : memref<16x49x32xf32, #tpu.memory_space<vmem>>, vector<1x49x32xf32>
    %139 = vector.shape_cast %138 : vector<1x49x32xf32> to vector<49x32xf32>
    %cst_116 = arith.constant dense<0.000000e+00> : vector<1x32xf32>
    %140 = tpu.matmul %137, %139, %cst_116 {dimension_numbers = #tpu.dot_dimension_numbers<[1], [0], [0], [1], [0, 0, 1, 1], [], []>} : vector<1x49xf32>, vector<49x32xf32>, vector<1x32xf32> -> vector<1x32xf32>
    %141 = arith.addf %136, %140 : vector<1x32xf32>
    %142 = vector.extract_strided_slice %70 {offsets = [14, 0], sizes = [1, 49], strides = [1, 1]} : vector<16x49xf32> to vector<1x49xf32>
    %c14 = arith.constant 14 : index
    %c0_117 = arith.constant 0 : index
    %c0_118 = arith.constant 0 : index
    %143 = vector.load %arg8[%c14, %c0_117, %c0_118] : memref<16x49x32xf32, #tpu.memory_space<vmem>>, vector<1x49x32xf32>
    %144 = vector.shape_cast %143 : vector<1x49x32xf32> to vector<49x32xf32>
    %cst_119 = arith.constant dense<0.000000e+00> : vector<1x32xf32>
    %145 = tpu.matmul %142, %144, %cst_119 {dimension_numbers = #tpu.dot_dimension_numbers<[1], [0], [0], [1], [0, 0, 1, 1], [], []>} : vector<1x49xf32>, vector<49x32xf32>, vector<1x32xf32> -> vector<1x32xf32>
    %146 = arith.addf %141, %145 : vector<1x32xf32>
    %147 = vector.extract_strided_slice %70 {offsets = [15, 0], sizes = [1, 49], strides = [1, 1]} : vector<16x49xf32> to vector<1x49xf32>
    %c15 = arith.constant 15 : index
    %c0_120 = arith.constant 0 : index
    %c0_121 = arith.constant 0 : index
    %148 = vector.load %arg8[%c15, %c0_120, %c0_121] : memref<16x49x32xf32, #tpu.memory_space<vmem>>, vector<1x49x32xf32>
    %149 = vector.shape_cast %148 : vector<1x49x32xf32> to vector<49x32xf32>
    %cst_122 = arith.constant dense<0.000000e+00> : vector<1x32xf32>
    %150 = tpu.matmul %147, %149, %cst_122 {dimension_numbers = #tpu.dot_dimension_numbers<[1], [0], [0], [1], [0, 0, 1, 1], [], []>} : vector<1x49xf32>, vector<49x32xf32>, vector<1x32xf32> -> vector<1x32xf32>
    %151 = arith.addf %146, %150 : vector<1x32xf32>
    %c0_123 = arith.constant 0 : index
    %c0_124 = arith.constant 0 : index
    %152 = vector.load %arg9[%c0_123, %c0_124] : memref<1x32xf32, #tpu.memory_space<vmem>>, vector<1x32xf32>
    %153 = arith.addf %151, %152 : vector<1x32xf32>
    %cst_125 = arith.constant 0.000000e+00 : f32
    %154 = vector.broadcast %cst_125 : f32 to vector<1x32xf32>
    %155 = arith.maximumf %153, %154 : vector<1x32xf32>
    %156 = vector.extract_strided_slice %155 {offsets = [0, 0], sizes = [1, 16], strides = [1, 1]} : vector<1x32xf32> to vector<1x16xf32>
    %157 = vector.extract_strided_slice %155 {offsets = [0, 16], sizes = [1, 16], strides = [1, 1]} : vector<1x32xf32> to vector<1x16xf32>
    %c0_126 = arith.constant 0 : index
    %c0_127 = arith.constant 0 : index
    %158 = vector.load %arg10[%c0_126, %c0_127] : memref<16x4xf32, #tpu.memory_space<vmem>>, vector<16x4xf32>
    %cst_128 = arith.constant dense<0.000000e+00> : vector<1x4xf32>
    %159 = tpu.matmul %156, %158, %cst_128 {dimension_numbers = #tpu.dot_dimension_numbers<[1], [0], [0], [1], [0, 0, 1, 1], [], []>} : vector<1x16xf32>, vector<16x4xf32>, vector<1x4xf32> -> vector<1x4xf32>
    %c0_129 = arith.constant 0 : index
    %c0_130 = arith.constant 0 : index
    %160 = vector.load %arg11[%c0_129, %c0_130] : memref<1x4xf32, #tpu.memory_space<vmem>>, vector<1x4xf32>
    %161 = arith.addf %159, %160 : vector<1x4xf32>
    %c0_131 = arith.constant 0 : index
    %c0_132 = arith.constant 0 : index
    %162 = vector.load %arg12[%c0_131, %c0_132] : memref<16x1xf32, #tpu.memory_space<vmem>>, vector<16x1xf32>
    %cst_133 = arith.constant dense<0.000000e+00> : vector<1x1xf32>
    %163 = tpu.matmul %157, %162, %cst_133 {dimension_numbers = #tpu.dot_dimension_numbers<[1], [0], [0], [1], [0, 0, 1, 1], [], []>} : vector<1x16xf32>, vector<16x1xf32>, vector<1x1xf32> -> vector<1x1xf32>
    %c0_134 = arith.constant 0 : index
    %c0_135 = arith.constant 0 : index
    %164 = vector.load %arg13[%c0_134, %c0_135] : memref<1x1xf32, #tpu.memory_space<vmem>>, vector<1x1xf32>
    %165 = arith.addf %163, %164 : vector<1x1xf32>
    %166 = vector.broadcast %165 : vector<1x1xf32> to vector<1x4xf32>
    %167 = arith.addf %166, %161 : vector<1x4xf32>
    %cst_136 = arith.constant dense<0.000000e+00> : vector<1xf32>
    %168 = vector.multi_reduction <add>, %161, %cst_136 [1] : vector<1x4xf32> to vector<1xf32>
    %169 = vector.shape_cast %168 : vector<1xf32> to vector<1x1xf32>
    %cst_137 = arith.constant 4.000000e+00 : f32
    %170 = vector.broadcast %cst_137 : f32 to vector<1x1xf32>
    %171 = arith.divf %169, %170 : vector<1x1xf32>
    %172 = vector.broadcast %171 : vector<1x1xf32> to vector<1x4xf32>
    %173 = arith.subf %167, %172 : vector<1x4xf32>
    %174 = vector.shape_cast %173 : vector<1x4xf32> to vector<1x1x4xf32>
    %c0_138 = arith.constant 0 : index
    %c0_139 = arith.constant 0 : index
    %c0_140 = arith.constant 0 : index
    %175 = vector.load %arg14[%c0_138, %c0_139, %c0_140] : memref<1x1x4xf32, #tpu.memory_space<vmem>>, vector<1x1x4xf32>
    tpu.vector_store %arg14[%c0_138, %c0_139, %c0_140], %174 {strides = array<i32>} : memref<1x1x4xf32, #tpu.memory_space<vmem>>, vector<1x1x4xf32>,
    return
  }
  func.func @transform_0(%arg0: i32) -> (i32, i32, i32) {
    %c0_i32 = arith.constant 0 : i32
    %c0_i32_0 = arith.constant 0 : i32
    %c0_i32_1 = arith.constant 0 : i32
    return %arg0, %c0_i32, %c0_i32_0 : i32, i32, i32
  }
  func.func @transform_1(%arg0: i32) -> (i32, i32, i32) {
    %c0_i32 = arith.constant 0 : i32
    %c0_i32_0 = arith.constant 0 : i32
    %c0_i32_1 = arith.constant 0 : i32
    %c0_i32_2 = arith.constant 0 : i32
    return %c0_i32, %c0_i32_0, %c0_i32_1 : i32, i32, i32
  }
  func.func @transform_2(%arg0: i32) -> (i32, i32, i32) {
    %c0_i32 = arith.constant 0 : i32
    %c0_i32_0 = arith.constant 0 : i32
    %c0_i32_1 = arith.constant 0 : i32
    %c0_i32_2 = arith.constant 0 : i32
    return %c0_i32, %c0_i32_0, %c0_i32_1 : i32, i32, i32
  }
  func.func @transform_3(%arg0: i32) -> (i32, i32) {
    %c0_i32 = arith.constant 0 : i32
    %c0_i32_0 = arith.constant 0 : i32
    %c0_i32_1 = arith.constant 0 : i32
    return %c0_i32, %c0_i32_0 : i32, i32
  }
  func.func @transform_4(%arg0: i32) -> (i32, i32, i32) {
    %c0_i32 = arith.constant 0 : i32
    %c0_i32_0 = arith.constant 0 : i32
    %c0_i32_1 = arith.constant 0 : i32
    %c0_i32_2 = arith.constant 0 : i32
    return %c0_i32, %c0_i32_0, %c0_i32_1 : i32, i32, i32
  }
  func.func @transform_5(%arg0: i32) -> (i32, i32, i32) {
    %c0_i32 = arith.constant 0 : i32
    %c0_i32_0 = arith.constant 0 : i32
    %c0_i32_1 = arith.constant 0 : i32
    %c0_i32_2 = arith.constant 0 : i32
    return %c0_i32, %c0_i32_0, %c0_i32_1 : i32, i32, i32
  }
  func.func @transform_6(%arg0: i32) -> (i32, i32) {
    %c0_i32 = arith.constant 0 : i32
    %c0_i32_0 = arith.constant 0 : i32
    %c0_i32_1 = arith.constant 0 : i32
    return %c0_i32, %c0_i32_0 : i32, i32
  }
  func.func @transform_7(%arg0: i32) -> (i32, i32, i32) {
    %c0_i32 = arith.constant 0 : i32
    %c0_i32_0 = arith.constant 0 : i32
    %c0_i32_1 = arith.constant 0 : i32
    %c0_i32_2 = arith.constant 0 : i32
    return %c0_i32, %c0_i32_0, %c0_i32_1 : i32, i32, i32
  }
  func.func @transform_8(%arg0: i32) -> (i32, i32) {
    %c0_i32 = arith.constant 0 : i32
    %c0_i32_0 = arith.constant 0 : i32
    %c0_i32_1 = arith.constant 0 : i32
    return %c0_i32, %c0_i32_0 : i32, i32
  }
  func.func @transform_9(%arg0: i32) -> (i32, i32) {
    %c0_i32 = arith.constant 0 : i32
    %c0_i32_0 = arith.constant 0 : i32
    %c0_i32_1 = arith.constant 0 : i32
    return %c0_i32, %c0_i32_0 : i32, i32
  }
  func.func @transform_10(%arg0: i32) -> (i32, i32) {
    %c0_i32 = arith.constant 0 : i32
    %c0_i32_0 = arith.constant 0 : i32
    %c0_i32_1 = arith.constant 0 : i32
    return %c0_i32, %c0_i32_0 : i32, i32
  }
  func.func @transform_11(%arg0: i32) -> (i32, i32) {
    %c0_i32 = arith.constant 0 : i32
    %c0_i32_0 = arith.constant 0 : i32
    %c0_i32_1 = arith.constant 0 : i32
    return %c0_i32, %c0_i32_0 : i32, i32
  }
  func.func @transform_12(%arg0: i32) -> (i32, i32) {
    %c0_i32 = arith.constant 0 : i32
    %c0_i32_0 = arith.constant 0 : i32
    %c0_i32_1 = arith.constant 0 : i32
    return %c0_i32, %c0_i32_0 : i32, i32
  }
  func.func @transform_13(%arg0: i32) -> (i32, i32, i32) {
    %c0_i32 = arith.constant 0 : i32
    %c0_i32_0 = arith.constant 0 : i32
    %c0_i32_1 = arith.constant 0 : i32
    return %arg0, %c0_i32, %c0_i32_0 : i32, i32, i32
  }
}

</mosaic_0001>

<bundles_post_ra>
// kernel: shared_discrete_net_forward.1
= control target key start
LH: loop header
LB: loop body
LE: loop exit
PB: predicated region body
PF: predicated region fallthrough
CT: control target
= control target key end

     0   :  { %s6221_s0 = inlined_call_operand.vmem [shape: s32[2,4,256], index: 0, kind: input, shape index: {}]   ;;  %s6222_s1 = inlined_call_operand.vmem [shape: f32[4,256,100], index: 1, kind: input, shape index: {}]   ;;  %s6223_s2 = inlined_call_operand.vmem [shape: f32[4,16,4], index: 2, kind: input, shape index: {}]   ;;  %s6224_s3 = inlined_call_operand.vmem [shape: f32[16,1], index: 3, kind: input, shape index: {}]   ;;  %s6225_s4 = inlined_call_operand.vmem [shape: f32[4,100,49], index: 4, kind: input, shape index: {}]   ;;  %s6226_s5 = inlined_call_operand.vmem [shape: f32[4,16,16], index: 5, kind: input, shape index: {}]   ;;  %s6227_s6 = inlined_call_operand.vmem [shape: f32[16,1], index: 6, kind: input, shape index: {}]   ;;  %s6228_s7 = inlined_call_operand.vmem [shape: f32[16,49,32], index: 7, kind: input, shape index: {}]   ;;  %s6229_s8 = inlined_call_operand.vmem [shape: f32[1,32], index: 8, kind: input, shape index: {}]   ;;  %s6230_s9 = inlined_call_operand.vmem [shape: f32[16,4], index: 9, kind: input, shape index: {}]   ;;  %s6231_s10 = inlined_call_operand.vmem [shape: f32[1,4], index: 10, kind: input, shape index: {}]   ;;  %s6232_s11 = inlined_call_operand.vmem [shape: f32[16,1], index: 11, kind: input, shape index: {}]   ;;  %s6233_s12 = inlined_call_operand.<no memory space> [shape: f32[1,1], index: 12, kind: input, shape index: {}]   ;;  %s6234_s13 = inlined_call_operand.hbm [shape: f32[2,1,4], index: 13, kind: output, shape index: {}]  }
   0x1   :  { %v18_v0 = vstv %s6233_s12 }
   0x2   :  { %19 = vst [vmem:[#allocation2] sm:$0x1] %v18_v0 }
   0x3   :  { %20 = vsyncpa [#allocation4], 0 }
   0x4   :  { %22 = vsyncpa [#allocation4 + $0x1], 0  ;;  %s4877_s27 = smov 0   ;;  %s4879_s28 = smov 0  }
   0x5   :  { %s4881_s29 = smov 0   ;;  %s4883_s30 = smov 0  }
   0x6 LB: > { %6238 = sst [smem:[#allocation6_spill]] %s4793_s29  ;;  %s4898_s12 = sadd.s32 4294967295, %s4797_s30   ;;  %s4797_s30 = sphi %s4883_s30, %s6243_s30   ;;  %s4793_s29 = sphi %s4881_s29, %s6245_s29   ;;  %s4789_s28 = sphi %s4879_s28, %s6247_s28   ;;  %s4785_s27 = sphi %s4877_s27, %s6246_s27  }
   0x7   : > { %s3552_s14 = sadd.s32 4294967294, %s4797_s30   ;;  %s4902_s15 = sadd.s32 1, %s4797_s30  }
   0x8   : > { %6239 = sst [smem:[#allocation7_spill]] %s4902_s15  ;;  %s313_s16 = sadd.s32 1, %s4793_s29 }
   0x9   : > { %s310_s17 = ssub.s32 %s4797_s30, %s4902_s15  ;;  %p323_p0 = scmp.ne.s32.totalorder %s4793_s29, %s4789_s28 }
   0xa   : > { %p311_p1 = scmp.eq.s32.totalorder %s310_s17, 0  ;;  %p324_p2 = scmp.eq.s32.totalorder %s4898_s12, 1 }
   0xb   : > { %p329_p3 = scmp.ne.s32.totalorder %s4789_s28, %s4785_s27  ;;  %p330_p4 = scmp.eq.s32.totalorder %s3552_s14, 1 }
   0xc   : > { %s4913_s18 = scalar_select %p311_p1, %s4793_s29, %s313_s16  }
   0xd   : > { %p4915_p5 = por %p324_p2, %p323_p0  ;;  %p4919_p6 = por %p330_p4, %p329_p3 }
   0xe   : > { %6240 = sst [smem:[#allocation8_spill]] %s4913_s18  ;;  %p3555_p7 = scmp.ge.s32.totalorder %s4797_s30, 1 }
   0xf   : > { %p392_p8 = scmp.lt.s32.totalorder %s4797_s30, 3 }
  0x11   : > { %p393_p9 = pnand %p3555_p7, %p392_p8 }
  0x12   : > { %p435_p10 = scmp.lt.s32.totalorder (!%p393_p9), %s4898_s12, 1  ;;  %s4802_s16 = smov (!%p393_p9), 112  }
  0x13   : > { %396 = sbr.rel (%p393_p9) target bundleno = 2531 (0x9e3), region = 72  ;;  %s433_s21 = sand.u32 (!%p393_p9), 1, %s4789_s28  }
  0x14   : > { %s3876_s22 = sshll.u32 (!%p393_p9), %s4898_s12, 4 }
  0x18   : > { %v473_v1 = vld [vmem:[%s6222_s1 + $0xf8] sm:$0xff]  ;;  %v472_v5 = vld [vmem:[%s6222_s1 + $0xf0] sm:$0xff]  ;;  %v471_v9 = vld [vmem:[%s6222_s1 + $0xe8] sm:$0xff]  ;;  %s5013_s14 = scalar_select %p435_p10, %s4898_s12, 1  ;;  %vm655_vm0 = vcmask 31744   ;;  %vm662_vm1 = vcmask 1043456  }
  0x19   : > { %v3589_v2 = vld [vmem:[%s6222_s1 + $0x1f8] sm:$0xff]  ;;  %3880 = vmatprep.subr.mxu0 %v473_v1  ;;  %v3588_v6 = vld [vmem:[%s6222_s1 + $0x1f0] sm:$0xff]  ;;  %v3587_v10 = vld [vmem:[%s6222_s1 + $0x1e8] sm:$0xff]  ;;  %vm1238_vm2 = vcmask 818176   ;;  %vm1420_vm3 = vcmask 130048   ;;  %vm1975_vm4 = vcmask 1040384  }
  0x1a   : > { %v457_v3 = vld [vmem:[%s6222_s1 + $0x78] sm:$0xff]  ;;  %3915 = vmatprep.subr.mxu1 %v3589_v2  ;;  %v456_v7 = vld [vmem:[%s6222_s1 + $0x70] sm:$0xff]  ;;  %v455_v11 = vld [vmem:[%s6222_s1 + $0x68] sm:$0xff]  ;;  %s3879_s24 = sshll.u32 %s5013_s14, 3  ;;  %vm4801_vm5 = vmmov 0   ;;  %vm1972_vm6 = vcmask 400384  }
  0x1b   : > { %v3573_v4 = vld [vmem:[%s6222_s1 + $0x178] sm:$0xff]  ;;  %3881 = vmatpush3.msra.mxu0 %v457_v3  ;;  %v3572_v8 = vld [vmem:[%s6222_s1 + $0x170] sm:$0xff]  ;;  %v3571_v12 = vld [vmem:[%s6222_s1 + $0x168] sm:$0xff]  ;;  %s439_s15 = scalar_lea.vmem %s6221_s0, %s3879_s24  ;;  %vm3476_vm7 = vcmask 24576   ;;  %s434_s14 = scalar_lea.vmem [#allocation3], %s433_s21 }
  0x1c   : > { %3916 = vmatpush3.msra.mxu1 %v3573_v4  ;;  %3882 = vmatprep.subr.mxu0 %v472_v5  ;;  %v470_v13 = vld [vmem:[%s6222_s1 + $0xe0] sm:$0xff]  ;;  %v469_v17 = vld [vmem:[%s6222_s1 + $0xd8] sm:$0xff]  ;;  %v468_v21 = vld [vmem:[%s6222_s1 + $0xd0] sm:$0xff]  ;;  %s3497_s23 = sshll.u32 %s434_s14, 4  ;;  %s3495_s24 = scalar_lea.hbm %s6234_s13, %s3876_s22  ;;  %s3498_s23 = int_to_ptr.vmem [resolvable:$true] %s3497_s23 }
  0x1d   : > { %3917 = vmatprep.subr.mxu1 %v3588_v6  ;;  %3883 = vmatpush3.msra.mxu0 %v456_v7  ;;  %v3586_v14 = vld [vmem:[%s6222_s1 + $0x1e0] sm:$0xff]  ;;  %v3585_v18 = vld [vmem:[%s6222_s1 + $0x1d8] sm:$0xff]  ;;  %v3584_v22 = vld [vmem:[%s6222_s1 + $0x1d0] sm:$0xff]  ;;  %s4737_s26 = scalar_lea.vmem %s3498_s23, 16 }
  0x1e   : > { %3918 = vmatpush3.msra.mxu1 %v3572_v8  ;;  %3884 = vmatprep.subr.mxu0 %v471_v9  ;;  %v454_v15 = vld [vmem:[%s6222_s1 + $0x60] sm:$0xff]  ;;  %v453_v19 = vld [vmem:[%s6222_s1 + $0x58] sm:$0xff]  ;;  %v452_v23 = vld [vmem:[%s6222_s1 + $0x50] sm:$0xff]  ;;  %p4738_p11 = scmp.ne.s32.totalorder %s3498_s23, %s4737_s26 }
  0x1f   : > { %3919 = vmatprep.subr.mxu1 %v3587_v10  ;;  %v3570_v16 = vld [vmem:[%s6222_s1 + $0x160] sm:$0xff]  ;;  %3885 = vmatpush3.msra.mxu0 %v455_v11  ;;  %v3569_v20 = vld [vmem:[%s6222_s1 + $0x158] sm:$0xff]  ;;  %v3568_v24 = vld [vmem:[%s6222_s1 + $0x150] sm:$0xff] }
  0x20   : > { %3920 = vmatpush3.msra.mxu1 %v3571_v12  ;;  %3886 = vmatprep.subr.mxu0 %v470_v13  ;;  %v467_v25 = vld [vmem:[%s6222_s1 + $0xc8] sm:$0xff]  ;;  %v466_v29 = vld [vmem:[%s6222_s1 + $0xc0] sm:$0xff]  ;;  %v465_v33 = vld [vmem:[%s6222_s1 + $0xb8] sm:$0xff]  ;;  %p4739_p12 = pnand %p4738_p11, %p4915_p5 }
  0x21   : > { %3921 = vmatprep.subr.mxu1 %v3586_v14  ;;  %3887 = vmatpush3.msra.mxu0 %v454_v15  ;;  %v3583_v26 = vld [vmem:[%s6222_s1 + $0x1c8] sm:$0xff]  ;;  %v3582_v30 = vld [vmem:[%s6222_s1 + $0x1c0] sm:$0xff]  ;;  %v3581_v34 = vld [vmem:[%s6222_s1 + $0x1b8] sm:$0xff] }
  0x22   : > { %3922 = vmatpush3.msra.mxu1 %v3570_v16  ;;  %3888 = vmatprep.subr.mxu0 %v469_v17  ;;  %v451_v27 = vld [vmem:[%s6222_s1 + $0x48] sm:$0xff]  ;;  %v450_v31 = vld [vmem:[%s6222_s1 + $0x40] sm:$0xff]  ;;  %v449_v35 = vld [vmem:[%s6222_s1 + $0x38] sm:$0xff]  ;;  %p4740_p13 = pneg %p4739_p12 }
  0x23   : > { %3923 = vmatprep.subr.mxu1 %v3585_v18  ;;  %3889 = vmatpush3.msra.mxu0 %v453_v19  ;;  %v3567_v28 = vld [vmem:[%s6222_s1 + $0x148] sm:$0xff]  ;;  %v3566_v32 = vld [vmem:[%s6222_s1 + $0x140] sm:$0xff]  ;;  %v3565_v36 = vld [vmem:[%s6222_s1 + $0x138] sm:$0xff] }
  0x24   : > { %3924 = vmatpush3.msra.mxu1 %v3569_v20  ;;  %3890 = vmatprep.subr.mxu0 %v468_v21  ;;  %v464_v37 = vld [vmem:[%s6222_s1 + $0xb0] sm:$0xff]  ;;  %v463_v41 = vld [vmem:[%s6222_s1 + $0xa8] sm:$0xff]  ;;  %v462_v45 = vld [vmem:[%s6222_s1 + $0xa0] sm:$0xff] }
  0x25   : > { %3925 = vmatprep.subr.mxu1 %v3584_v22  ;;  %3891 = vmatpush3.msra.mxu0 %v452_v23  ;;  %v3580_v38 = vld [vmem:[%s6222_s1 + $0x1b0] sm:$0xff]  ;;  %v3579_v42 = vld [vmem:[%s6222_s1 + $0x1a8] sm:$0xff]  ;;  %v3578_v46 = vld [vmem:[%s6222_s1 + $0x1a0] sm:$0xff] }
  0x26   : > { %3926 = vmatpush3.msra.mxu1 %v3568_v24  ;;  %3892 = vmatprep.subr.mxu0 %v467_v25  ;;  %v448_v39 = vld [vmem:[%s6222_s1 + $0x30] sm:$0xff]  ;;  %v447_v43 = vld [vmem:[%s6222_s1 + $0x28] sm:$0xff]  ;;  %v446_v47 = vld [vmem:[%s6222_s1 + $0x20] sm:$0xff] }
  0x27   : > { %3927 = vmatprep.subr.mxu1 %v3583_v26  ;;  %3893 = vmatpush3.msra.mxu0 %v451_v27  ;;  %v3564_v40 = vld [vmem:[%s6222_s1 + $0x130] sm:$0xff]  ;;  %v3563_v44 = vld [vmem:[%s6222_s1 + $0x128] sm:$0xff]  ;;  %v3562_v48 = vld [vmem:[%s6222_s1 + $0x120] sm:$0xff] }
  0x28   : > { %3928 = vmatpush3.msra.mxu1 %v3567_v28  ;;  %3894 = vmatprep.subr.mxu0 %v466_v29  ;;  %v440_v49 = vld [vmem:[%s439_s15] sm:$0xff]  ;;  %v461_v50 = vld [vmem:[%s6222_s1 + $0x98] sm:$0xff]  ;;  %v460_v54 = vld [vmem:[%s6222_s1 + $0x90] sm:$0xff]  ;;  %s3485_s15 = scalar_lea.sflag [#allocation4], %s433_s21 }
  0x29   : > { %3929 = vmatprep.subr.mxu1 %v3582_v30  ;;  %3895 = vmatpush3.msra.mxu0 %v450_v31  ;;  %v3577_v51 = vld [vmem:[%s6222_s1 + $0x198] sm:$0xff]  ;;  %v3576_v55 = vld [vmem:[%s6222_s1 + $0x190] sm:$0xff]  ;;  %v5097_v56 = vcvt.s32.f32 %v440_v49  ;;  %v459_v59 = vld [vmem:[%s6222_s1 + $0x88] sm:$0xff] }
  0x2a   : > { %3930 = vmatpush3.msra.mxu1 %v3566_v32  ;;  %3896 = vmatprep.subr.mxu0 %v465_v33  ;;  %v445_v52 = vld [vmem:[%s6222_s1 + $0x18] sm:$0xff]  ;;  %v444_v57 = vld [vmem:[%s6222_s1 + $0x10] sm:$0xff]  ;;  %v3575_v60 = vld [vmem:[%s6222_s1 + $0x188] sm:$0xff] }
  0x2b   : > { %3931 = vmatprep.subr.mxu1 %v3581_v34  ;;  %3897 = vmatpush3.msra.mxu0 %v449_v35  ;;  %v3561_v53 = vld [vmem:[%s6222_s1 + $0x118] sm:$0xff]  ;;  %v3560_v58 = vld [vmem:[%s6222_s1 + $0x110] sm:$0xff]  ;;  %v443_v61 = vld [vmem:[%s6222_s1 + $0x8] sm:$0xff]  ;;  %v5125_v1 = vcombine.high %v5097_v56, %v5097_v56 }
  0x2c   : > { %3932 = vmatpush3.msra.mxu1 %v3565_v36  ;;  %3898 = vmatprep.subr.mxu0 %v464_v37  ;;  %v3559_v62 = vld [vmem:[%s6222_s1 + $0x108] sm:$0xff]  ;;  %v458_v63 = vld [vmem:[%s6222_s1 + $0x80] sm:$0xff]  ;;  %v3590_v4 = vld [vmem:[%s6223_s2 + $0x10] sm:$0xff] }
  0x2d   : > { %3933 = vmatprep.subr.mxu1 %v3580_v38  ;;  %3899 = vmatpush3.msra.mxu0 %v448_v39  ;;  %v3574_v0 = vld [vmem:[%s6222_s1 + $0x180] sm:$0xff]  ;;  %v3591_v12 = vld [vmem:[%s6223_s2 + $0x18] sm:$0xff]  ;;  %v548_v13 = vld [vmem:[%s6223_s2 + $0x8] sm:$0xff] }
  0x2e   : > { %3934 = vmatpush3.msra.mxu1 %v3564_v40  ;;  %3900 = vmatprep.subr.mxu0 %v463_v41  ;;  %v442_v2 = vld [vmem:[%s6222_s1] sm:$0xff]  ;;  %v3629_v14 = vld [vmem:[%s6222_s1 + $0x2f8] sm:$0xff]  ;;  %v3628_v16 = vld [vmem:[%s6222_s1 + $0x2f0] sm:$0xff] }
  0x2f   : > { %3935 = vmatprep.subr.mxu1 %v3579_v42  ;;  %3901 = vmatpush3.msra.mxu0 %v447_v43  ;;  %v3558_v3 = vld [vmem:[%s6222_s1 + $0x100] sm:$0xff]  ;;  %v3613_v15 = vld [vmem:[%s6222_s1 + $0x278] sm:$0xff]  ;;  %v3612_v17 = vld [vmem:[%s6222_s1 + $0x270] sm:$0xff] }
  0x30   : > { %3936 = vmatpush3.msra.mxu1 %v3563_v44  ;;  %3902 = vmatprep.subr.mxu0 %v462_v45  ;;  %v547_v5 = vld [vmem:[%s6223_s2] sm:$0xff]  ;;  %v3627_v18 = vld [vmem:[%s6222_s1 + $0x2e8] sm:$0xff]  ;;  %v3625_v22 = vld [vmem:[%s6222_s1 + $0x2d8] sm:$0xff] }
  0x31   : > { %3937 = vmatprep.subr.mxu1 %v3578_v46  ;;  %3903 = vmatpush3.msra.mxu0 %v446_v47  ;;  %v3611_v19 = vld [vmem:[%s6222_s1 + $0x268] sm:$0xff]  ;;  %v3626_v20 = vld [vmem:[%s6222_s1 + $0x2e0] sm:$0xff]  ;;  %v3609_v23 = vld [vmem:[%s6222_s1 + $0x258] sm:$0xff] }
  0x32   : > { %3938 = vmatpush3.msra.mxu1 %v3562_v48  ;;  %3904 = vmatprep.subr.mxu0 %v461_v50  ;;  %v3610_v21 = vld [vmem:[%s6222_s1 + $0x260] sm:$0xff]  ;;  %v3624_v24 = vld [vmem:[%s6222_s1 + $0x2d0] sm:$0xff]  ;;  %v3623_v26 = vld [vmem:[%s6222_s1 + $0x2c8] sm:$0xff] }
  0x33   : > { %3939 = vmatprep.subr.mxu1 %v3577_v51  ;;  %3905 = vmatpush3.msra.mxu0 %v445_v52  ;;  %v3608_v25 = vld [vmem:[%s6222_s1 + $0x250] sm:$0xff]  ;;  %v3607_v27 = vld [vmem:[%s6222_s1 + $0x248] sm:$0xff]  ;;  %v3622_v28 = vld [vmem:[%s6222_s1 + $0x2c0] sm:$0xff] }
  0x34   : > { %3940 = vmatpush3.msra.mxu1 %v3561_v53  ;;  %3906 = vmatprep.subr.mxu0 %v460_v54  ;;  %v3606_v29 = vld [vmem:[%s6222_s1 + $0x240] sm:$0xff]  ;;  %v3621_v30 = vld [vmem:[%s6222_s1 + $0x2b8] sm:$0xff]  ;;  %v3620_v32 = vld [vmem:[%s6222_s1 + $0x2b0] sm:$0xff] }
  0x35   : > { %3941 = vmatprep.subr.mxu1 %v3576_v55  ;;  %3907 = vmatpush3.msra.mxu0 %v444_v57  ;;  %v3605_v31 = vld [vmem:[%s6222_s1 + $0x238] sm:$0xff]  ;;  %v3604_v33 = vld [vmem:[%s6222_s1 + $0x230] sm:$0xff]  ;;  %v3619_v34 = vld [vmem:[%s6222_s1 + $0x2a8] sm:$0xff] }
  0x36   : > { %3942 = vmatpush3.msra.mxu1 %v3560_v58  ;;  %3908 = vmatprep.subr.mxu0 %v459_v59  ;;  %v3603_v35 = vld [vmem:[%s6222_s1 + $0x228] sm:$0xff]  ;;  %v3618_v36 = vld [vmem:[%s6222_s1 + $0x2a0] sm:$0xff]  ;;  %v3617_v38 = vld [vmem:[%s6222_s1 + $0x298] sm:$0xff] }
  0x37   : > { %3943 = vmatprep.subr.mxu1 %v3575_v60  ;;  %3909 = vmatpush3.msra.mxu0 %v443_v61  ;;  %v3602_v37 = vld [vmem:[%s6222_s1 + $0x220] sm:$0xff]  ;;  %v3601_v39 = vld [vmem:[%s6222_s1 + $0x218] sm:$0xff]  ;;  %v3616_v40 = vld [vmem:[%s6222_s1 + $0x290] sm:$0xff] }
  0x38   : > { %3944 = vmatpush3.msra.mxu1 %v3559_v62  ;;  %3910 = vmatprep.subr.mxu0 %v458_v63  ;;  %v3600_v41 = vld [vmem:[%s6222_s1 + $0x210] sm:$0xff]  ;;  %v3615_v42 = vld [vmem:[%s6222_s1 + $0x288] sm:$0xff]  ;;  %v3614_v44 = vld [vmem:[%s6222_s1 + $0x280] sm:$0xff] }
  0x39   : > { %3945 = vmatprep.subr.mxu1 %v3574_v0  ;;  %3911 = vmatpush3.msra.mxu0 %v442_v2  ;;  %v3599_v43 = vld [vmem:[%s6222_s1 + $0x208] sm:$0xff]  ;;  %v3598_v45 = vld [vmem:[%s6222_s1 + $0x200] sm:$0xff]  ;;  %v3666_v55 = vld [vmem:[%s6222_s1 + $0x3f8] sm:$0xff] }
  0x3a   : > { %541 = vmatprep.mubr.f32.mxu0 %v5125_v1  ;;  %3946 = vmatpush3.msra.mxu1 %v3558_v3  ;;  %v3630_v46 = vld [vmem:[%s6223_s2 + $0x20] sm:$0xff]  ;;  %v3631_v54 = vld [vmem:[%s6223_s2 + $0x28] sm:$0xff]  ;;  %v3650_v57 = vld [vmem:[%s6222_s1 + $0x378] sm:$0xff] }
  0x3b   : > { %646 = vmatprep.mubr.f32.mxu1 %v5125_v1  ;;  %542 = vmatmul.mubr.f32.vlgmr.msra.gmra.mxu0 %v5097_v56  ;;  %v3665_v58 = vld [vmem:[%s6222_s1 + $0x3f0] sm:$0xff]  ;;  %v3664_v60 = vld [vmem:[%s6222_s1 + $0x3e8] sm:$0xff]  ;;  %v3663_v62 = vld [vmem:[%s6222_s1 + $0x3e0] sm:$0xff] }
  0x3c   : > { %647 = vmatmul.mubr.f32.vlgmr.msra.gmra.mxu1 %v5097_v56  ;;  %4244 = vmatprep.mubr.msk.f32.mxu0 %vm655_vm0, %v3590_v4  ;;  %v3649_v59 = vld [vmem:[%s6222_s1 + $0x370] sm:$0xff]  ;;  %v3648_v61 = vld [vmem:[%s6222_s1 + $0x368] sm:$0xff]  ;;  %v3647_v63 = vld [vmem:[%s6222_s1 + $0x360] sm:$0xff] }
  0x3d   : > { %4249 = vmatprep.mubr.msk.f32.mxu1 %vm655_vm0, %v547_v5  ;;  %v3662_v0 = vld [vmem:[%s6222_s1 + $0x3d8] sm:$0xff]  ;;  %v3661_v2 = vld [vmem:[%s6222_s1 + $0x3d0] sm:$0xff]  ;;  %v3660_v4 = vld [vmem:[%s6222_s1 + $0x3c8] sm:$0xff] }
  0x3e   : > { %v3645_v3 = vld [vmem:[%s6222_s1 + $0x350] sm:$0xff]  ;;  %v3644_v5 = vld [vmem:[%s6222_s1 + $0x348] sm:$0xff] }
  0xfb   : > { %v3912_v6 = vpop.f32.mrf.mxu0 }
  0xfc   : > { %v3947_v7 = vpop.f32.mrf.mxu1 }
  0xfd   : > { %v3913_v8 = vpop.f32.mrf.mxu0 }
  0xfe   : > { %v3948_v9 = vpop.f32.mrf.mxu1  ;;  %v3914_v10 = vadd.f32 %v3913_v8, %v3912_v6  ;;  %v3659_v6 = vld [vmem:[%s6222_s1 + $0x3c0] sm:$0xff]  ;;  %v3658_v8 = vld [vmem:[%s6222_s1 + $0x3b8] sm:$0xff] }
  0xff   : > { %v3949_v11 = vadd.f32 %v3948_v9, %v3947_v7  ;;  %v3643_v7 = vld [vmem:[%s6222_s1 + $0x340] sm:$0xff]  ;;  %v3642_v9 = vld [vmem:[%s6222_s1 + $0x338] sm:$0xff] }
 0x100   : > { %4247 = vmatprep.subr.msk.mxu1 %vm662_vm1, %v3914_v10 }
 0x101   : > { %4242 = vmatprep.subr.msk.mxu0 %vm662_vm1, %v3949_v11  ;;  %4248 = vmatpush3.msk.msra.mxu1 %vm662_vm1, %v3914_v10  ;;  %v3657_v10 = vld [vmem:[%s6222_s1 + $0x3b0] sm:$0xff] }
 0x102   : > { %4243 = vmatpush3.msk.msra.mxu0 %vm662_vm1, %v3949_v11  ;;  %4250 = vmatmul.mubr.msk.f32.vlgmr.msra.gmra.mxu1 %vm655_vm0, %v548_v13  ;;  %v3641_v11 = vld [vmem:[%s6222_s1 + $0x330] sm:$0xff]  ;;  %v3640_v13 = vld [vmem:[%s6222_s1 + $0x328] sm:$0xff] }
 0x103   : > { %4245 = vmatmul.mubr.msk.f32.vlgmr.msra.gmra.mxu0 %vm655_vm0, %v3591_v12  ;;  %3956 = vmatprep.subr.mxu0 %v3629_v14  ;;  %v3656_v12 = vld [vmem:[%s6222_s1 + $0x3a8] sm:$0xff]  ;;  %v3655_v14 = vld [vmem:[%s6222_s1 + $0x3a0] sm:$0xff] }
 0x104   : > { %922 = vmatprep.mubr.f32.mxu0 %v5125_v1  ;;  %3957 = vmatpush3.msra.mxu0 %v3613_v15  ;;  %v3639_v15 = vld [vmem:[%s6222_s1 + $0x320] sm:$0xff] }
 0x105   : > { %3958 = vmatprep.subr.mxu0 %v3628_v16  ;;  %4254 = vmatprep.mubr.msk.f32.mxu1 %vm655_vm0, %v3630_v46  ;;  %v3654_v16 = vld [vmem:[%s6222_s1 + $0x398] sm:$0xff] }
 0x106   : > { %3959 = vmatpush3.msra.mxu0 %v3612_v17  ;;  %v3638_v17 = vld [vmem:[%s6222_s1 + $0x318] sm:$0xff] }
 0x107   : > { %3960 = vmatprep.subr.mxu0 %v3627_v18  ;;  %v3653_v18 = vld [vmem:[%s6222_s1 + $0x390] sm:$0xff]  ;;  %v1236_v46 = vld [vmem:[%s6225_s4 + $0x58] sm:$0xff] }
 0x108   : > { %3961 = vmatpush3.msra.mxu0 %v3611_v19  ;;  %v3637_v19 = vld [vmem:[%s6222_s1 + $0x310] sm:$0xff] }
 0x109   : > { %3962 = vmatprep.subr.mxu0 %v3626_v20  ;;  %v3652_v20 = vld [vmem:[%s6222_s1 + $0x388] sm:$0xff] }
 0x10a   : > { %3963 = vmatpush3.msra.mxu0 %v3610_v21  ;;  %v3636_v21 = vld [vmem:[%s6222_s1 + $0x308] sm:$0xff] }
 0x10b   : > { %3964 = vmatprep.subr.mxu0 %v3625_v22  ;;  %v3651_v22 = vld [vmem:[%s6222_s1 + $0x380] sm:$0xff] }
 0x10c   : > { %3965 = vmatpush3.msra.mxu0 %v3609_v23  ;;  %v3635_v23 = vld [vmem:[%s6222_s1 + $0x300] sm:$0xff] }
 0x10d   : > { %3966 = vmatprep.subr.mxu0 %v3624_v24  ;;  %v3667_v24 = vld [vmem:[%s6223_s2 + $0x30] sm:$0xff] }
 0x10e   : > { %3967 = vmatpush3.msra.mxu0 %v3608_v25  ;;  %v1209_v25 = vld [vmem:[%s6224_s3] sm:$0xff] }
 0x10f   : > { %3968 = vmatprep.subr.mxu0 %v3623_v26  ;;  %v4799_v26 = vmov 0  }
 0x110   : > { %3969 = vmatpush3.msra.mxu0 %v3607_v27  ;;  %4735 = vset.pattern.permute.xlu0 %v4799_v26  ;;  %v3687_v27 = vld [vmem:[%s6225_s4 + $0xc8] sm:$0xf] }
 0x111   : > { %3970 = vmatprep.subr.mxu0 %v3622_v28  ;;  %4736 = vset.pattern.permute.xlu1 %v4799_v26  ;;  %v1210_v28 = vld [vmem:[%s6224_s3 + $0x8] sm:$0xff]  ;;  %v3701_v26 = vld [vmem:[%s6225_s4 + $0xf0] sm:$0xff] }
 0x112   : > { %3971 = vmatpush3.msra.mxu0 %v3606_v29  ;;  %1213 = vperm.xlu0 %4735, %v1209_v25   ;;  %v3685_v29 = vld [vmem:[%s6225_s4 + $0xb8] sm:$0xff] }
 0x113   : > { %3972 = vmatprep.subr.mxu0 %v3621_v30  ;;  %v3684_v30 = vld [vmem:[%s6225_s4 + $0xb0] sm:$0xff]  ;;  %v3702_v25 = vld [vmem:[%s6225_s4 + $0xf8] sm:$0xff] }
 0x114   : > { %3973 = vmatpush3.msra.mxu0 %v3605_v31  ;;  %v3683_v31 = vld [vmem:[%s6225_s4 + $0xa8] sm:$0xff] }
 0x115   : > { %3974 = vmatprep.subr.mxu0 %v3620_v32  ;;  %v3682_v32 = vld [vmem:[%s6225_s4 + $0xa0] sm:$0xff] }
 0x116   : > { %3975 = vmatpush3.msra.mxu0 %v3604_v33  ;;  %1218 = vperm.xlu0 %4735, %v1210_v28   ;;  %v3681_v33 = vld [vmem:[%s6225_s4 + $0x98] sm:$0xff] }
 0x117   : > { %3976 = vmatprep.subr.mxu0 %v3619_v34  ;;  %v3680_v34 = vld [vmem:[%s6225_s4 + $0x90] sm:$0xff]  ;;  %v3698_v28 = vld [vmem:[%s6225_s4 + $0xd8] sm:$0xff] }
 0x118   : > { %3977 = vmatpush3.msra.mxu0 %v3603_v35 }
 0x119   : > { %3978 = vmatprep.subr.mxu0 %v3618_v36 }
 0x11a   : > { %3979 = vmatpush3.msra.mxu0 %v3602_v37 }
 0x11b   : > { %3980 = vmatprep.subr.mxu0 %v3617_v38 }
 0x11c   : > { %3981 = vmatpush3.msra.mxu0 %v3601_v39 }
 0x11d   : > { %3982 = vmatprep.subr.mxu0 %v3616_v40 }
 0x11e   : > { %3983 = vmatpush3.msra.mxu0 %v3600_v41 }
 0x11f   : > { %3984 = vmatprep.subr.mxu0 %v3615_v42 }
 0x120   : > { %3985 = vmatpush3.msra.mxu0 %v3599_v43 }
 0x121   : > { %3986 = vmatprep.subr.mxu0 %v3614_v44  ;;  %v3668_v44 = vld [vmem:[%s6223_s2 + $0x38] sm:$0xff] }
 0x122   : > { %3987 = vmatpush3.msra.mxu0 %v3598_v45  ;;  %v1237_v45 = vld [vmem:[%s6225_s4 + $0x60] sm:$0xf] }
 0x123   : > { %923 = vmatmul.mubr.f32.vlgmr.msra.gmra.mxu0 %v5097_v56 }
 0x124   : > { %4259 = vmatprep.mubr.msk.f32.mxu0 %vm655_vm0, %v3667_v24  ;;  %v3703_v24 = vld [vmem:[%s6225_s4 + $0x100] sm:$0xff] }
 0x1c2   : > { %v4251_v48 = vpop.f32.mrf.mxu1 }
 0x1c3   : > { %v4246_v47 = vpop.f32.mrf.mxu0 }
 0x1c4   : > { %v5259_v49 = vadd.f32 %v4251_v48, %v4246_v47  ;;  %v816_v35 = vpop.f32.mrf.mxu1  ;;  %v1235_v47 = vld [vmem:[%s6225_s4 + $0x50] sm:$0xff]  ;;  %v1234_v48 = vld [vmem:[%s6225_s4 + $0x48] sm:$0xff] }
 0x1c5   : > { %v5261_v50 = vpop.f32.mrf.mxu0 }
 0x1c6   : > { %v817_v37 = vadd.f32 %v816_v35, %v5261_v50  ;;  %v1232_v50 = vld [vmem:[%s6225_s4 + $0x38] sm:$0xff] }
 0x1e3   : > { %v3988_v51 = vpop.f32.mrf.mxu0 }
 0x1e5   : > { %v3989_v52 = vpop.f32.mrf.mxu0 }
 0x1e6   : > { %v3990_v53 = vadd.f32 %v3989_v52, %v3988_v51  ;;  %v1231_v51 = vld [vmem:[%s6225_s4 + $0x30] sm:$0xff]  ;;  %v1230_v52 = vld [vmem:[%s6225_s4 + $0x28] sm:$0xff] }
 0x1e8   : > { %4252 = vmatprep.subr.msk.mxu1 %vm662_vm1, %v3990_v53 }
 0x1e9   : > { %4253 = vmatpush3.msk.msra.mxu1 %vm662_vm1, %v3990_v53  ;;  %v1229_v53 = vld [vmem:[%s6225_s4 + $0x20] sm:$0xff] }
 0x1ea   : > { %4255 = vmatmul.mubr.msk.f32.vlgmr.msra.gmra.mxu1 %vm655_vm0, %v3631_v54  ;;  %3994 = vmatprep.subr.mxu1 %v3666_v55  ;;  %v3679_v54 = vld [vmem:[%s6225_s4 + $0x88] sm:$0xff]  ;;  %v1228_v55 = vld [vmem:[%s6225_s4 + $0x18] sm:$0xff] }
 0x1eb   : > { %3995 = vmatpush3.msra.mxu1 %v3650_v57  ;;  %1114 = vmatprep.mubr.f32.mxu1 %v5125_v1  ;;  %v3646_v1 = vld [vmem:[%s6222_s1 + $0x358] sm:$0xff]  ;;  %v3678_v57 = vld [vmem:[%s6225_s4 + $0x80] sm:$0xff] }
 0x1ec   : > { %3996 = vmatprep.subr.mxu1 %v3665_v58  ;;  %v1227_v58 = vld [vmem:[%s6225_s4 + $0x10] sm:$0xff] }
 0x1ed   : > { %3997 = vmatpush3.msra.mxu1 %v3649_v59  ;;  %v3677_v59 = vld [vmem:[%s6225_s4 + $0x78] sm:$0xff] }
 0x1ee   : > { %3998 = vmatprep.subr.mxu1 %v3664_v60  ;;  %v1226_v60 = vld [vmem:[%s6225_s4 + $0x8] sm:$0xff] }
 0x1ef   : > { %3999 = vmatpush3.msra.mxu1 %v3648_v61  ;;  %v3676_v61 = vld [vmem:[%s6225_s4 + $0x70] sm:$0xff] }
 0x1f0   : > { %4000 = vmatprep.subr.mxu1 %v3663_v62  ;;  %v1225_v62 = vld [vmem:[%s6225_s4] sm:$0xff] }
 0x1f1   : > { %4001 = vmatpush3.msra.mxu1 %v3647_v63  ;;  %v3675_v63 = vld [vmem:[%s6225_s4 + $0x68] sm:$0xff] }
 0x1f2   : > { %4002 = vmatprep.subr.mxu1 %v3662_v0  ;;  %v1214_v0 = vpop.permute.xlu0 %1213 }
 0x1f3   : > { %4003 = vmatpush3.msra.mxu1 %v3646_v1 }
 0x1f4   : > { %4004 = vmatprep.subr.mxu1 %v3661_v2 }
 0x1f5   : > { %4005 = vmatpush3.msra.mxu1 %v3645_v3 }
 0x1f6   : > { %4006 = vmatprep.subr.mxu1 %v3660_v4  ;;  %v1219_v3 = vpop.permute.xlu0 %1218 }
 0x1f7   : > { %4007 = vmatpush3.msra.mxu1 %v3644_v5 }
 0x1f8   : > { %4008 = vmatprep.subr.mxu1 %v3659_v6 }
 0x1f9   : > { %4009 = vmatpush3.msra.mxu1 %v3643_v7 }
 0x1fa   : > { %4010 = vmatprep.subr.mxu1 %v3658_v8 }
 0x1fb   : > { %4011 = vmatpush3.msra.mxu1 %v3642_v9 }
 0x1fc   : > { %4012 = vmatprep.subr.mxu1 %v3657_v10  ;;  %v3691_v10 = vld [vmem:[%s6226_s5 + $0x10] sm:$0xff] }
 0x1fd   : > { %4013 = vmatpush3.msra.mxu1 %v3641_v11  ;;  %v1323_v11 = vld [vmem:[%s6226_s5] sm:$0xff] }
 0x1fe   : > { %4014 = vmatprep.subr.mxu1 %v3656_v12 }
 0x1ff   : > { %4015 = vmatpush3.msra.mxu1 %v3640_v13 }
 0x200   : > { %4016 = vmatprep.subr.mxu1 %v3655_v14 }
 0x201   : > { %4017 = vmatpush3.msra.mxu1 %v3639_v15 }
 0x202   : > { %4018 = vmatprep.subr.mxu1 %v3654_v16  ;;  %v3692_v16 = vld [vmem:[%s6226_s5 + $0x18] sm:$0xff] }
 0x203   : > { %4019 = vmatpush3.msra.mxu1 %v3638_v17  ;;  %v3709_v17 = vld [vmem:[%s6225_s4 + $0x130] sm:$0xf] }
 0x204   : > { %4020 = vmatprep.subr.mxu1 %v3653_v18  ;;  %v1324_v18 = vld [vmem:[%s6226_s5 + $0x8] sm:$0xff] }
 0x205   : > { %4021 = vmatpush3.msra.mxu1 %v3637_v19  ;;  %v3708_v19 = vld [vmem:[%s6225_s4 + $0x128] sm:$0xff] }
 0x206   : > { %4022 = vmatprep.subr.mxu1 %v3652_v20  ;;  %v3707_v20 = vld [vmem:[%s6225_s4 + $0x120] sm:$0xff] }
 0x207   : > { %4023 = vmatpush3.msra.mxu1 %v3636_v21  ;;  %v3706_v21 = vld [vmem:[%s6225_s4 + $0x118] sm:$0xff] }
 0x208   : > { %4024 = vmatprep.subr.mxu1 %v3651_v22  ;;  %v3705_v22 = vld [vmem:[%s6225_s4 + $0x110] sm:$0xff] }
 0x209   : > { %4025 = vmatpush3.msra.mxu1 %v3635_v23  ;;  %v3704_v23 = vld [vmem:[%s6225_s4 + $0x108] sm:$0xff] }
 0x20a   : > { %1115 = vmatmul.mubr.f32.vlgmr.msra.gmra.mxu1 %v5097_v56  ;;  %4291 = vmatprep.subr.msk.mxu1 %vm662_vm1, %v3687_v27  ;;  %v3686_v56 = vld [vmem:[%s6225_s4 + $0xc0] sm:$0xff] }
 0x20b   : > { %4292 = vmatpush3.msk.msra.mxu1 %vm662_vm1, %v3687_v27  ;;  %v3700_v27 = vld [vmem:[%s6225_s4 + $0xe8] sm:$0xff] }
 0x20c   : > { %4293 = vmatprep.subr.mxu1 %v3686_v56 }
 0x20d   : > { %4294 = vmatpush3.msra.mxu1 %v3686_v56  ;;  %v3699_v56 = vld [vmem:[%s6225_s4 + $0xe0] sm:$0xff] }
 0x20e   : > { %4295 = vmatprep.subr.mxu1 %v3685_v29 }
 0x20f   : > { %4296 = vmatpush3.msra.mxu1 %v3685_v29  ;;  %v3697_v29 = vld [vmem:[%s6225_s4 + $0xd0] sm:$0xff] }
 0x210   : > { %4297 = vmatprep.subr.mxu1 %v3684_v30 }
 0x211   : > { %4298 = vmatpush3.msra.mxu1 %v3684_v30  ;;  %v3713_v30 = vld [vmem:[%s6226_s5 + $0x20] sm:$0xff] }
 0x212   : > { %4299 = vmatprep.subr.mxu1 %v3683_v31 }
 0x213   : > { %4300 = vmatpush3.msra.mxu1 %v3683_v31 }
 0x214   : > { %4301 = vmatprep.subr.mxu1 %v3682_v32 }
 0x215   : > { %4302 = vmatpush3.msra.mxu1 %v3682_v32 }
 0x216   : > { %4303 = vmatprep.subr.mxu1 %v3681_v33 }
 0x217   : > { %4304 = vmatpush3.msra.mxu1 %v3681_v33 }
 0x218   : > { %4305 = vmatprep.subr.mxu1 %v3680_v34 }
 0x219   : > { %4306 = vmatpush3.msra.mxu1 %v3680_v34 }
 0x21a   : > { %4307 = vmatprep.subr.mxu1 %v3679_v54 }
 0x21b   : > { %4308 = vmatpush3.msra.mxu1 %v3679_v54  ;;  %v4800_v54 = vmov 0.0  }
 0x21c   : > { %4309 = vmatprep.subr.mxu1 %v3678_v57 }
 0x21d   : > { %4310 = vmatpush3.msra.mxu1 %v3678_v57  ;;  %v1940_v57 = vld [vmem:[%s6227_s6 + $0x8] sm:$0xff] }
 0x21e   : > { %4311 = vmatprep.subr.mxu1 %v3677_v59 }
 0x21f   : > { %4312 = vmatpush3.msra.mxu1 %v3677_v59 }
 0x220   : > { %4313 = vmatprep.subr.mxu1 %v3676_v61 }
 0x221   : > { %4314 = vmatpush3.msra.mxu1 %v3676_v61 }
 0x222   : > { %4315 = vmatprep.subr.mxu1 %v3675_v63 }
 0x223   : > { %4316 = vmatpush3.msra.mxu1 %v3675_v63 }
 0x2aa   : > { %v4256_v36 = vpop.f32.mrf.mxu1 }
 0x2ab   : > { %v5405_v38 = vadd.f32 %v4256_v36, %v5259_v49  ;;  %v1233_v49 = vld [vmem:[%s6225_s4 + $0x40] sm:$0xff] }
 0x2ac   : > { %v1006_v39 = vpop.f32.mrf.mxu1 }
 0x2ad   : > { %v5407_v40 = vadd.f32 %v1006_v39, %v817_v37  ;;  %v3714_v37 = vld [vmem:[%s6226_s5 + $0x28] sm:$0xff]  ;;  %v3728_v39 = vld [vmem:[%s6225_s4 + $0x190] sm:$0xff] }
 0x2ca   : > { %v4026_v41 = vpop.f32.mrf.mxu1 }
 0x2cc   : > { %v4027_v42 = vpop.f32.mrf.mxu1 }
 0x2cd   : > { %v4028_v43 = vadd.f32 %v4027_v42, %v4026_v41  ;;  %v3726_v41 = vld [vmem:[%s6225_s4 + $0x180] sm:$0xff]  ;;  %v3725_v42 = vld [vmem:[%s6225_s4 + $0x178] sm:$0xff] }
 0x2cf   : > { %4257 = vmatprep.subr.msk.mxu0 %vm662_vm1, %v4028_v43 }
 0x2d0   : > { %4258 = vmatpush3.msk.msra.mxu0 %vm662_vm1, %v4028_v43  ;;  %v3724_v43 = vld [vmem:[%s6225_s4 + $0x170] sm:$0xff] }
 0x2d1   : > { %4260 = vmatmul.mubr.msk.f32.vlgmr.msra.gmra.mxu0 %vm655_vm0, %v3668_v44  ;;  %4262 = vmatprep.subr.msk.mxu0 %vm662_vm1, %v1237_v45  ;;  %v3723_v44 = vld [vmem:[%s6225_s4 + $0x168] sm:$0xff] }
 0x2d2   : > { %4263 = vmatpush3.msk.msra.mxu0 %vm662_vm1, %v1237_v45  ;;  %v3722_v45 = vld [vmem:[%s6225_s4 + $0x160] sm:$0xff] }
 0x2d3   : > { %4264 = vmatprep.subr.mxu0 %v1236_v46 }
 0x2d4   : > { %4265 = vmatpush3.msra.mxu0 %v1236_v46  ;;  %v3721_v46 = vld [vmem:[%s6225_s4 + $0x158] sm:$0xff] }
 0x2d5   : > { %4266 = vmatprep.subr.mxu0 %v1235_v47 }
 0x2d6   : > { %4267 = vmatpush3.msra.mxu0 %v1235_v47  ;;  %v3720_v47 = vld [vmem:[%s6225_s4 + $0x150] sm:$0xff] }
 0x2d7   : > { %4268 = vmatprep.subr.mxu0 %v1234_v48 }
 0x2d8   : > { %4269 = vmatpush3.msra.mxu0 %v1234_v48  ;;  %v3719_v48 = vld [vmem:[%s6225_s4 + $0x148] sm:$0xff] }
 0x2d9   : > { %4270 = vmatprep.subr.mxu0 %v1233_v49 }
 0x2da   : > { %4271 = vmatpush3.msra.mxu0 %v1233_v49  ;;  %v3718_v49 = vld [vmem:[%s6225_s4 + $0x140] sm:$0xff] }
 0x2db   : > { %4272 = vmatprep.subr.mxu0 %v1232_v50 }
 0x2dc   : > { %4273 = vmatpush3.msra.mxu0 %v1232_v50  ;;  %v3717_v50 = vld [vmem:[%s6225_s4 + $0x138] sm:$0xff] }
 0x2dd   : > { %4274 = vmatprep.subr.mxu0 %v1231_v51 }
 0x2de   : > { %4275 = vmatpush3.msra.mxu0 %v1231_v51  ;;  %v3733_v51 = vld [vmem:[%s6226_s5 + $0x30] sm:$0xff] }
 0x2df   : > { %4276 = vmatprep.subr.mxu0 %v1230_v52 }
 0x2e0   : > { %4277 = vmatpush3.msra.mxu0 %v1230_v52  ;;  %v1939_v52 = vld [vmem:[%s6227_s6] sm:$0xff] }
 0x2e1   : > { %4278 = vmatprep.subr.mxu0 %v1229_v53  ;;  %1943 = vperm.xlu1 %4736, %v1939_v52   ;;  %v3799_v52 = vld [vmem:[%s6228_s7 + $0x1b8] sm:$0x1] }
 0x2e2   : > { %4279 = vmatpush3.msra.mxu0 %v1229_v53  ;;  %v1961_v53 = vld [vmem:[%s6228_s7 + $0x30] sm:$0x1] }
 0x2e3   : > { %4280 = vmatprep.subr.mxu0 %v1228_v55 }
 0x2e4   : > { %4281 = vmatpush3.msra.mxu0 %v1228_v55  ;;  %v1960_v55 = vld [vmem:[%s6228_s7 + $0x28] sm:$0xff] }
 0x2e5   : > { %4282 = vmatprep.subr.mxu0 %v1227_v58  ;;  %1948 = vperm.xlu1 %4736, %v1940_v57   ;;  %v3798_v57 = vld [vmem:[%s6228_s7 + $0x1b0] sm:$0xff] }
 0x2e6   : > { %4283 = vmatpush3.msra.mxu0 %v1227_v58  ;;  %v1959_v58 = vld [vmem:[%s6228_s7 + $0x20] sm:$0xff] }
 0x2e7   : > { %4284 = vmatprep.subr.mxu0 %v1226_v60 }
 0x2e8   : > { %4285 = vmatpush3.msra.mxu0 %v1226_v60 }
 0x2e9   : > { %4286 = vmatprep.subr.mxu0 %v1225_v62 }
 0x2ea   : > { %4287 = vmatpush3.msra.mxu0 %v1225_v62 }
 0x391   : > { %v4261_v1 = vpop.f32.mrf.mxu0 }
 0x392   : > { %v1208_v2 = vadd.f32 %v4261_v1, %v5405_v38  ;;  %v3729_v38 = vld [vmem:[%s6225_s4 + $0x198] sm:$0xf] }
 0x393   : > { %v1198_v4 = vpop.f32.mrf.mxu0 }
 0x394   : > { %v1207_v5 = vadd.f32 %v1198_v4, %v5407_v40  ;;  %v1222_v6 = vadd.f32 %v1219_v3, %v1208_v2  ;;  %v3727_v40 = vld [vmem:[%s6225_s4 + $0x188] sm:$0xff]  ;;  %v3734_v3 = vld [vmem:[%s6226_s5 + $0x38] sm:$0xff] }
 0x395   : > { %v3743_v4 = vld [vmem:[%s6228_s7 + $0x68] sm:$0x1] }
 0x396   : > { %v1221_v7 = vadd.f32 %v1214_v0, %v1207_v5  ;;  %v5475_v9 = vmax.f32 %v1222_v6, 0.0  ;;  %v3742_v5 = vld [vmem:[%s6228_s7 + $0x60] sm:$0xff]  ;;  %v3741_v6 = vld [vmem:[%s6228_s7 + $0x58] sm:$0xff] }
 0x398   : > { %v5473_v8 = vmax.f32 %v1221_v7, 0.0  ;;  %v1958_v7 = vld [vmem:[%s6228_s7 + $0x18] sm:$0xff] }
 0x39a   : > { %4288 = vmatprep.mubr.msk.f32.mxu0 %vm1238_vm2, %v5473_v8  ;;  %4317 = vmatprep.mubr.msk.f32.mxu1 %vm1238_vm2, %v5473_v8 }
 0x39b   : > { %4289 = vmatmul.mubr.msk.f32.vlgmr.msra.gmra.mxu0 %vm1238_vm2, %v5475_v9  ;;  %4318 = vmatmul.mubr.msk.f32.vlgmr.msra.gmra.mxu1 %vm1238_vm2, %v5475_v9 }
 0x39c   : > { %4324 = vmatprep.mubr.msk.f32.mxu0 %vm1420_vm3, %v3691_v10  ;;  %4331 = vmatprep.mubr.msk.f32.mxu1 %vm1420_vm3, %v1323_v11  ;;  %v3739_v10 = vld [vmem:[%s6228_s7 + $0x48] sm:$0xff] }
 0x39d   : > { %v1956_v11 = vld [vmem:[%s6228_s7 + $0x8] sm:$0xff] }
 0x45b   : > { %v4290_v12 = vpop.f32.mrf.mxu0  ;;  %v4319_v13 = vpop.f32.mrf.mxu1 }
 0x45c   : > { %4320 = vmatprep.subr.mxu0 %v4319_v13  ;;  %4327 = vmatprep.subr.mxu1 %v4290_v12 }
 0x45d   : > { %v1314_v14 = vpop.f32.mrf.mxu0  ;;  %v1408_v15 = vpop.f32.mrf.mxu1  ;;  %4321 = vmatpush3.msra.mxu0 %v4319_v13  ;;  %4328 = vmatpush3.msra.mxu1 %v4290_v12  ;;  %v3738_v12 = vld [vmem:[%s6228_s7 + $0x40] sm:$0xff] }
 0x45e   : > { %4322 = vmatprep.subr.mxu0 %v1408_v15  ;;  %4329 = vmatprep.subr.mxu1 %v1314_v14  ;;  %v1955_v13 = vld [vmem:[%s6228_s7] sm:$0xff] }
 0x45f   : > { %4323 = vmatpush3.msra.mxu0 %v1408_v15  ;;  %4330 = vmatpush3.msra.mxu1 %v1314_v14  ;;  %v3737_v14 = vld [vmem:[%s6228_s7 + $0x38] sm:$0xff] }
 0x460   : > { %4325 = vmatmul.mubr.msk.f32.vlgmr.msra.gmra.mxu0 %vm1420_vm3, %v3692_v16  ;;  %4334 = vmatprep.subr.msk.mxu0 %vm662_vm1, %v3709_v17 }
 0x461   : > { %4332 = vmatmul.mubr.msk.f32.vlgmr.msra.gmra.mxu1 %vm1420_vm3, %v1324_v18  ;;  %4335 = vmatpush3.msk.msra.mxu0 %vm662_vm1, %v3709_v17  ;;  %v1944_v18 = vpop.permute.xlu1 %1943 }
 0x462   : > { %4360 = vmatprep.mubr.msk.f32.mxu0 %vm1238_vm2, %v5473_v8  ;;  %4336 = vmatprep.subr.mxu0 %v3708_v19 }
 0x463   : > { %4337 = vmatpush3.msra.mxu0 %v3708_v19  ;;  %4367 = vmatprep.mubr.msk.f32.mxu1 %vm1420_vm3, %v3713_v30  ;;  %v3750_v30 = vld [vmem:[%s6228_s7 + $0x80] sm:$0xff] }
 0x464   : > { %4338 = vmatprep.subr.mxu0 %v3707_v20 }
 0x465   : > { %4339 = vmatpush3.msra.mxu0 %v3707_v20 }
 0x466   : > { %4340 = vmatprep.subr.mxu0 %v3706_v21 }
 0x467   : > { %4341 = vmatpush3.msra.mxu0 %v3706_v21  ;;  %v3763_v21 = vld [vmem:[%s6228_s7 + $0xd8] sm:$0x1] }
 0x468   : > { %4342 = vmatprep.subr.mxu0 %v3705_v22 }
 0x469   : > { %4343 = vmatpush3.msra.mxu0 %v3705_v22 }
 0x46a   : > { %4344 = vmatprep.subr.mxu0 %v3704_v23 }
 0x46b   : > { %4345 = vmatpush3.msra.mxu0 %v3704_v23  ;;  %v3754_v23 = vld [vmem:[%s6228_s7 + $0xa0] sm:$0x1] }
 0x46c   : > { %4346 = vmatprep.subr.mxu0 %v3703_v24 }
 0x46d   : > { %4347 = vmatpush3.msra.mxu0 %v3703_v24  ;;  %v3762_v24 = vld [vmem:[%s6228_s7 + $0xd0] sm:$0xff] }
 0x46e   : > { %4348 = vmatprep.subr.mxu0 %v3702_v25 }
 0x46f   : > { %4349 = vmatpush3.msra.mxu0 %v3702_v25  ;;  %v3753_v25 = vld [vmem:[%s6228_s7 + $0x98] sm:$0xff] }
 0x470   : > { %4350 = vmatprep.subr.mxu0 %v3701_v26 }
 0x471   : > { %4351 = vmatpush3.msra.mxu0 %v3701_v26  ;;  %v3761_v26 = vld [vmem:[%s6228_s7 + $0xc8] sm:$0xff] }
 0x472   : > { %4352 = vmatprep.subr.mxu0 %v3700_v27 }
 0x473   : > { %4353 = vmatpush3.msra.mxu0 %v3700_v27  ;;  %v3752_v27 = vld [vmem:[%s6228_s7 + $0x90] sm:$0xff] }
 0x474   : > { %4354 = vmatprep.subr.mxu0 %v3699_v56 }
 0x475   : > { %4355 = vmatpush3.msra.mxu0 %v3699_v56  ;;  %v3760_v56 = vld [vmem:[%s6228_s7 + $0xc0] sm:$0xff] }
 0x476   : > { %4356 = vmatprep.subr.mxu0 %v3698_v28 }
 0x477   : > { %4357 = vmatpush3.msra.mxu0 %v3698_v28  ;;  %v3751_v28 = vld [vmem:[%s6228_s7 + $0x88] sm:$0xff] }
 0x478   : > { %4358 = vmatprep.subr.mxu0 %v3697_v29 }
 0x479   : > { %4359 = vmatpush3.msra.mxu0 %v3697_v29  ;;  %v3759_v29 = vld [vmem:[%s6228_s7 + $0xb8] sm:$0xff] }
 0x47a   : > { %4361 = vmatmul.mubr.msk.f32.vlgmr.msra.gmra.mxu0 %vm1238_vm2, %v5475_v9 }
 0x47b   : > { %4403 = vmatprep.mubr.msk.f32.mxu0 %vm1420_vm3, %v3733_v51  ;;  %v3766_v51 = vld [vmem:[%s6228_s7 + $0xe0] sm:$0xff] }
 0x520   : > { %v4326_v31 = vpop.f32.mrf.mxu0 }
 0x521   : > { %v4333_v32 = vpop.f32.mrf.mxu1 }
 0x522   : > { %v5550_v33 = vadd.f32 %v4333_v32, %v4326_v31  ;;  %v5552_v34 = vpop.f32.mrf.mxu0  ;;  %v3758_v31 = vld [vmem:[%s6228_s7 + $0xb0] sm:$0xff]  ;;  %v3749_v32 = vld [vmem:[%s6228_s7 + $0x78] sm:$0xff] }
 0x523   : > { %v1574_v59 = vpop.f32.mrf.mxu1 }
 0x524   : > { %v1575_v61 = vadd.f32 %v1574_v59, %v5552_v34  ;;  %v3797_v59 = vld [vmem:[%s6228_s7 + $0x1a8] sm:$0xff] }
 0x53a   : > { %v4362_v35 = vpop.f32.mrf.mxu0 }
 0x53b   : > { %4363 = vmatprep.subr.mxu1 %v4362_v35 }
 0x53c   : > { %v1666_v36 = vpop.f32.mrf.mxu0  ;;  %4364 = vmatpush3.msra.mxu1 %v4362_v35  ;;  %v3748_v35 = vld [vmem:[%s6228_s7 + $0x70] sm:$0xff] }
 0x53d   : > { %4365 = vmatprep.subr.mxu1 %v1666_v36 }
 0x53e   : > { %4366 = vmatpush3.msra.mxu1 %v1666_v36  ;;  %v3781_v36 = vld [vmem:[%s6228_s7 + $0x148] sm:$0x1] }
 0x53f   : > { %4368 = vmatmul.mubr.msk.f32.vlgmr.msra.gmra.mxu1 %vm1420_vm3, %v3714_v37  ;;  %4370 = vmatprep.subr.msk.mxu1 %vm662_vm1, %v3729_v38 }
 0x540   : > { %4371 = vmatpush3.msk.msra.mxu1 %vm662_vm1, %v3729_v38  ;;  %4396 = vmatprep.mubr.msk.f32.mxu1 %vm1238_vm2, %v5473_v8  ;;  %v3740_v8 = vld [vmem:[%s6228_s7 + $0x50] sm:$0xff] }
 0x541   : > { %4372 = vmatprep.subr.mxu1 %v3728_v39  ;;  %v3772_v38 = vld [vmem:[%s6228_s7 + $0x110] sm:$0x1] }
 0x542   : > { %4373 = vmatpush3.msra.mxu1 %v3728_v39  ;;  %v3780_v39 = vld [vmem:[%s6228_s7 + $0x140] sm:$0xff] }
 0x543   : > { %4374 = vmatprep.subr.mxu1 %v3727_v40 }
 0x544   : > { %4375 = vmatpush3.msra.mxu1 %v3727_v40  ;;  %v3771_v40 = vld [vmem:[%s6228_s7 + $0x108] sm:$0xff] }
 0x545   : > { %4376 = vmatprep.subr.mxu1 %v3726_v41 }
 0x546   : > { %4377 = vmatpush3.msra.mxu1 %v3726_v41  ;;  %v3779_v41 = vld [vmem:[%s6228_s7 + $0x138] sm:$0xff] }
 0x547   : > { %4378 = vmatprep.subr.mxu1 %v3725_v42 }
 0x548   : > { %4379 = vmatpush3.msra.mxu1 %v3725_v42  ;;  %v3770_v42 = vld [vmem:[%s6228_s7 + $0x100] sm:$0xff] }
 0x549   : > { %4380 = vmatprep.subr.mxu1 %v3724_v43 }
 0x54a   : > { %4381 = vmatpush3.msra.mxu1 %v3724_v43  ;;  %v3778_v43 = vld [vmem:[%s6228_s7 + $0x130] sm:$0xff] }
 0x54b   : > { %4382 = vmatprep.subr.mxu1 %v3723_v44 }
 0x54c   : > { %4383 = vmatpush3.msra.mxu1 %v3723_v44  ;;  %v3769_v44 = vld [vmem:[%s6228_s7 + $0xf8] sm:$0xff] }
 0x54d   : > { %4384 = vmatprep.subr.mxu1 %v3722_v45 }
 0x54e   : > { %4385 = vmatpush3.msra.mxu1 %v3722_v45  ;;  %v3777_v45 = vld [vmem:[%s6228_s7 + $0x128] sm:$0xff] }
 0x54f   : > { %4386 = vmatprep.subr.mxu1 %v3721_v46 }
 0x550   : > { %4387 = vmatpush3.msra.mxu1 %v3721_v46  ;;  %v3768_v46 = vld [vmem:[%s6228_s7 + $0xf0] sm:$0xff] }
 0x551   : > { %4388 = vmatprep.subr.mxu1 %v3720_v47 }
 0x552   : > { %4389 = vmatpush3.msra.mxu1 %v3720_v47  ;;  %v3776_v47 = vld [vmem:[%s6228_s7 + $0x120] sm:$0xff] }
 0x553   : > { %4390 = vmatprep.subr.mxu1 %v3719_v48 }
 0x554   : > { %4391 = vmatpush3.msra.mxu1 %v3719_v48  ;;  %v3767_v48 = vld [vmem:[%s6228_s7 + $0xe8] sm:$0xff] }
 0x555   : > { %4392 = vmatprep.subr.mxu1 %v3718_v49 }
 0x556   : > { %4393 = vmatpush3.msra.mxu1 %v3718_v49  ;;  %v3775_v49 = vld [vmem:[%s6228_s7 + $0x118] sm:$0xff] }
 0x557   : > { %4394 = vmatprep.subr.mxu1 %v3717_v50 }
 0x558   : > { %4395 = vmatpush3.msra.mxu1 %v3717_v50 }
 0x559   : > { %4397 = vmatmul.mubr.msk.f32.vlgmr.msra.gmra.mxu1 %vm1238_vm2, %v5475_v9  ;;  %4423 = vmatprep.subr.mxu1 %v4800_v54  ;;  %v1957_v9 = vld [vmem:[%s6228_s7 + $0x10] sm:$0xff] }
 0x55a   : > { %4424 = vmatpush3.msk.msra.mxu1 %vm1975_vm4, %v1961_v53  ;;  %4437 = vmatprep.mubr.msk.f32.mxu1 %vm4801_vm5, %v4800_v54 }
 0x55b   : > { %4425 = vmatprep.subr.mxu1 %v4800_v54 }
 0x55c   : > { %4426 = vmatpush3.msra.mxu1 %v1960_v55  ;;  %v3790_v55 = vld [vmem:[%s6228_s7 + $0x180] sm:$0x1] }
 0x55d   : > { %4427 = vmatprep.subr.mxu1 %v4800_v54 }
 0x55e   : > { %4428 = vmatpush3.msra.mxu1 %v1959_v58  ;;  %v3789_v58 = vld [vmem:[%s6228_s7 + $0x178] sm:$0xff] }
 0x55f   : > { %4429 = vmatprep.subr.mxu1 %v4800_v54 }
 0x560   : > { %4430 = vmatpush3.msra.mxu1 %v1958_v7  ;;  %v3817_v7 = vld [vmem:[%s6228_s7 + $0x228] sm:$0x1] }
 0x561   : > { %4431 = vmatprep.subr.mxu1 %v4800_v54 }
 0x562   : > { %4432 = vmatpush3.msra.mxu1 %v1957_v9  ;;  %v3808_v9 = vld [vmem:[%s6228_s7 + $0x1f0] sm:$0x1] }
 0x563   : > { %4433 = vmatprep.subr.mxu1 %v4800_v54 }
 0x564   : > { %4434 = vmatpush3.msra.mxu1 %v1956_v11  ;;  %v3816_v11 = vld [vmem:[%s6228_s7 + $0x220] sm:$0xff] }
 0x565   : > { %4435 = vmatprep.subr.mxu1 %v4800_v54 }
 0x566   : > { %4436 = vmatpush3.msra.mxu1 %v1955_v13  ;;  %v3807_v13 = vld [vmem:[%s6228_s7 + $0x1e8] sm:$0xff] }
 0x567   : > { %4457 = vmatprep.subr.mxu1 %v4800_v54 }
 0x5ff   : > { %v4369_v60 = vpop.f32.mrf.mxu1 }
 0x600   : > { %v5629_v62 = vadd.f32 %v4369_v60, %v5550_v33  ;;  %v3757_v33 = vld [vmem:[%s6228_s7 + $0xa8] sm:$0xff]  ;;  %v3788_v60 = vld [vmem:[%s6228_s7 + $0x170] sm:$0xff] }
 0x601   : > { %v1750_v63 = vpop.f32.mrf.mxu1 }
 0x602   : > { %v1759_v0 = vadd.f32 %v1750_v63, %v1575_v61  ;;  %v3796_v61 = vld [vmem:[%s6228_s7 + $0x1a0] sm:$0xff]  ;;  %v3787_v63 = vld [vmem:[%s6228_s7 + $0x168] sm:$0xff] }
 0x619   : > { %v4398_v1 = vpop.f32.mrf.mxu1 }
 0x61a   : > { %4399 = vmatprep.subr.mxu0 %v4398_v1 }
 0x61b   : > { %v1844_v2 = vpop.f32.mrf.mxu1  ;;  %4400 = vmatpush3.msra.mxu0 %v4398_v1  ;;  %v3786_v1 = vld [vmem:[%s6228_s7 + $0x160] sm:$0xff] }
 0x61c   : > { %4401 = vmatprep.subr.mxu0 %v1844_v2 }
 0x61d   : > { %4402 = vmatpush3.msra.mxu0 %v1844_v2  ;;  %v3794_v2 = vld [vmem:[%s6228_s7 + $0x190] sm:$0xff] }
 0x61e   : > { %4404 = vmatmul.mubr.msk.f32.vlgmr.msra.gmra.mxu0 %vm1420_vm3, %v3734_v3  ;;  %4406 = vmatprep.subr.mxu0 %v4800_v54  ;;  %v3785_v3 = vld [vmem:[%s6228_s7 + $0x158] sm:$0xff] }
 0x61f   : > { %4407 = vmatpush3.msk.msra.mxu0 %vm1975_vm4, %v3743_v4  ;;  %4420 = vmatprep.mubr.msk.f32.mxu0 %vm4801_vm5, %v4800_v54  ;;  %v3793_v4 = vld [vmem:[%s6228_s7 + $0x188] sm:$0xff] }
 0x620   : > { %4408 = vmatprep.subr.mxu0 %v4800_v54 }
 0x621   : > { %4409 = vmatpush3.msra.mxu0 %v3742_v5 }
 0x622   : > { %4410 = vmatprep.subr.mxu0 %v4800_v54 }
 0x623   : > { %4411 = vmatpush3.msra.mxu0 %v3741_v6  ;;  %v3784_v6 = vld [vmem:[%s6228_s7 + $0x150] sm:$0xff] }
 0x624   : > { %4412 = vmatprep.subr.mxu0 %v4800_v54 }
 0x625   : > { %4413 = vmatpush3.msra.mxu0 %v3740_v8 }
 0x626   : > { %4414 = vmatprep.subr.mxu0 %v4800_v54 }
 0x627   : > { %4415 = vmatpush3.msra.mxu0 %v3739_v10 }
 0x628   : > { %4416 = vmatprep.subr.mxu0 %v4800_v54 }
 0x629   : > { %4417 = vmatpush3.msra.mxu0 %v3738_v12  ;;  %v1949_v12 = vpop.permute.xlu1 %1948 }
 0x62a   : > { %4418 = vmatprep.subr.mxu0 %v4800_v54 }
 0x62b   : > { %4419 = vmatpush3.msra.mxu0 %v3737_v14  ;;  %v3806_v14 = vld [vmem:[%s6228_s7 + $0x1e0] sm:$0xff] }
 0x62c   : > { %4440 = vmatprep.subr.mxu0 %v4800_v54 }
 0x6de   : > { %v5685_v15 = vpop.f32.mrf.mxu0 }
 0x6df   : > { %v1938_v10 = vadd.f32 %v5685_v15, %v5629_v62  ;;  %v3815_v62 = vld [vmem:[%s6228_s7 + $0x218] sm:$0xff] }
 0x6e0   : > { %v1928_v16 = vpop.f32.mrf.mxu0 }
 0x6e1   : > { %v1937_v17 = vadd.f32 %v1928_v16, %v1759_v0  ;;  %v3795_v0 = vld [vmem:[%s6228_s7 + $0x198] sm:$0xff]  ;;  %v1952_v15 = vadd.f32 %v1949_v12, %v1938_v10  ;;  %v3814_v16 = vld [vmem:[%s6228_s7 + $0x210] sm:$0xff]  ;;  %v3318_v12 = vld [vmem:[%s6230_s9 + $0x8] sm:$0xff] }
 0x6e2   : > { %v3856_v10 = vld [vmem:[%s6228_s7 + $0x310] sm:$0xff] }
 0x6e3   : > { %v1951_v19 = vadd.f32 %v1944_v18, %v1937_v17  ;;  %v3805_v17 = vld [vmem:[%s6228_s7 + $0x1d8] sm:$0xff]  ;;  %v3813_v18 = vld [vmem:[%s6228_s7 + $0x208] sm:$0xff] }
 0x6e5   : > { %v5687_v20 = vmax.f32 %v1951_v19, 0.0  ;;  %v3804_v19 = vld [vmem:[%s6228_s7 + $0x1d0] sm:$0xff] }
 0x6e7   : > { %4438 = vmatmul.mubr.msk.f32.vlgmr.msra.gmra.mxu1 %vm1972_vm6, %v5687_v20  ;;  %v1971_v22 = vrot.slane %v5687_v20, 1  ;;  %v2217_v34 = vrot.slane %v5687_v20, 3  ;;  %v2132_v37 = vrot.slane %v5687_v20, 2  ;;  %v2387_v50 = vrot.slane %v5687_v20, 5 }
 0x6e8   : > { %4458 = vmatpush3.msk.msra.mxu1 %vm1975_vm4, %v3763_v21  ;;  %4471 = vmatprep.mubr.msk.f32.mxu1 %vm4801_vm5, %v4800_v54  ;;  %v2302_v53 = vrot.slane %v5687_v20, 4  ;;  %v2557_v5 = vrot.slane %v5687_v20, 7  ;;  %v2472_v8 = vrot.slane %v5687_v20, 6  ;;  %v5931_v20 = vmax.f32 %v1952_v15, 0.0  ;;  %v3812_v21 = vld [vmem:[%s6228_s7 + $0x200] sm:$0xff] }
 0x6e9   : > { %4459 = vmatprep.subr.mxu1 %v4800_v54  ;;  %4421 = vmatmul.mubr.msk.f32.vlgmr.msra.gmra.mxu0 %vm1972_vm6, %v1971_v22  ;;  %v3803_v22 = vld [vmem:[%s6228_s7 + $0x1c8] sm:$0xff] }
 0x6ea   : > { %4441 = vmatpush3.msk.msra.mxu0 %vm1975_vm4, %v3754_v23  ;;  %4460 = vmatpush3.msra.mxu1 %v3762_v24  ;;  %v3811_v23 = vld [vmem:[%s6228_s7 + $0x1f8] sm:$0xff]  ;;  %v2727_v24 = vrot.slane %v5931_v20, 1 }
 0x6eb   : > { %4442 = vmatprep.subr.mxu0 %v4800_v54  ;;  %4461 = vmatprep.subr.mxu1 %v4800_v54 }
 0x6ec   : > { %4443 = vmatpush3.msra.mxu0 %v3753_v25  ;;  %4462 = vmatpush3.msra.mxu1 %v3761_v26  ;;  %v3802_v25 = vld [vmem:[%s6228_s7 + $0x1c0] sm:$0xff]  ;;  %v3835_v26 = vld [vmem:[%s6228_s7 + $0x298] sm:$0x1] }
 0x6ed   : > { %4444 = vmatprep.subr.mxu0 %v4800_v54  ;;  %4463 = vmatprep.subr.mxu1 %v4800_v54 }
 0x6ee   : > { %4445 = vmatpush3.msra.mxu0 %v3752_v27  ;;  %4464 = vmatpush3.msra.mxu1 %v3760_v56  ;;  %v3826_v27 = vld [vmem:[%s6228_s7 + $0x260] sm:$0x1]  ;;  %v3834_v56 = vld [vmem:[%s6228_s7 + $0x290] sm:$0xff] }
 0x6ef   : > { %4446 = vmatprep.subr.mxu0 %v4800_v54  ;;  %4465 = vmatprep.subr.mxu1 %v4800_v54 }
 0x6f0   : > { %4447 = vmatpush3.msra.mxu0 %v3751_v28  ;;  %4466 = vmatpush3.msra.mxu1 %v3759_v29  ;;  %v3825_v28 = vld [vmem:[%s6228_s7 + $0x258] sm:$0xff]  ;;  %v3833_v29 = vld [vmem:[%s6228_s7 + $0x288] sm:$0xff] }
 0x6f1   : > { %4448 = vmatprep.subr.mxu0 %v4800_v54  ;;  %4467 = vmatprep.subr.mxu1 %v4800_v54 }
 0x6f2   : > { %4449 = vmatpush3.msra.mxu0 %v3750_v30  ;;  %4468 = vmatpush3.msra.mxu1 %v3758_v31  ;;  %v3824_v30 = vld [vmem:[%s6228_s7 + $0x250] sm:$0xff]  ;;  %v3832_v31 = vld [vmem:[%s6228_s7 + $0x280] sm:$0xff] }
 0x6f3   : > { %4450 = vmatprep.subr.mxu0 %v4800_v54  ;;  %4469 = vmatprep.subr.mxu1 %v4800_v54 }
 0x6f4   : > { %4451 = vmatpush3.msra.mxu0 %v3749_v32  ;;  %4470 = vmatpush3.msra.mxu1 %v3757_v33  ;;  %v3823_v32 = vld [vmem:[%s6228_s7 + $0x248] sm:$0xff]  ;;  %v3831_v33 = vld [vmem:[%s6228_s7 + $0x278] sm:$0xff] }
 0x6f5   : > { %4452 = vmatprep.subr.mxu0 %v4800_v54  ;;  %4472 = vmatmul.mubr.msk.f32.vlgmr.msra.gmra.mxu1 %vm1972_vm6, %v2217_v34  ;;  %v3822_v34 = vld [vmem:[%s6228_s7 + $0x240] sm:$0xff] }
 0x6f6   : > { %4491 = vmatprep.subr.mxu1 %v4800_v54  ;;  %4453 = vmatpush3.msra.mxu0 %v3748_v35  ;;  %v3830_v35 = vld [vmem:[%s6228_s7 + $0x270] sm:$0xff] }
 0x6f7   : > { %4454 = vmatprep.mubr.msk.f32.mxu0 %vm4801_vm5, %v4800_v54  ;;  %4492 = vmatpush3.msk.msra.mxu1 %vm1975_vm4, %v3781_v36  ;;  %v3821_v36 = vld [vmem:[%s6228_s7 + $0x238] sm:$0xff] }
 0x6f8   : > { %4455 = vmatmul.mubr.msk.f32.vlgmr.msra.gmra.mxu0 %vm1972_vm6, %v2132_v37  ;;  %4474 = vmatprep.subr.mxu0 %v4800_v54  ;;  %v3829_v37 = vld [vmem:[%s6228_s7 + $0x268] sm:$0xff] }
 0x6f9   : > { %4493 = vmatprep.subr.mxu1 %v4800_v54  ;;  %4475 = vmatpush3.msk.msra.mxu0 %vm1975_vm4, %v3772_v38  ;;  %v2897_v38 = vrot.slane %v5931_v20, 3 }
 0x6fa   : > { %4494 = vmatpush3.msra.mxu1 %v3780_v39  ;;  %4476 = vmatprep.subr.mxu0 %v4800_v54  ;;  %v3820_v39 = vld [vmem:[%s6228_s7 + $0x230] sm:$0xff] }
 0x6fb   : > { %4495 = vmatprep.subr.mxu1 %v4800_v54  ;;  %4477 = vmatpush3.msra.mxu0 %v3771_v40  ;;  %v3853_v40 = vld [vmem:[%s6228_s7 + $0x308] sm:$0x1] }
 0x6fc   : > { %4496 = vmatpush3.msra.mxu1 %v3779_v41  ;;  %4478 = vmatprep.subr.mxu0 %v4800_v54  ;;  %v2812_v41 = vrot.slane %v5931_v20, 2 }
 0x6fd   : > { %4497 = vmatprep.subr.mxu1 %v4800_v54  ;;  %4479 = vmatpush3.msra.mxu0 %v3770_v42  ;;  %v3844_v42 = vld [vmem:[%s6228_s7 + $0x2d0] sm:$0x1] }
 0x6fe   : > { %4498 = vmatpush3.msra.mxu1 %v3778_v43  ;;  %4480 = vmatprep.subr.mxu0 %v4800_v54  ;;  %v3852_v43 = vld [vmem:[%s6228_s7 + $0x300] sm:$0xff] }
 0x6ff   : > { %4499 = vmatprep.subr.mxu1 %v4800_v54  ;;  %4481 = vmatpush3.msra.mxu0 %v3769_v44  ;;  %v3843_v44 = vld [vmem:[%s6228_s7 + $0x2c8] sm:$0xff] }
 0x700   : > { %4500 = vmatpush3.msra.mxu1 %v3777_v45  ;;  %4482 = vmatprep.subr.mxu0 %v4800_v54  ;;  %v3851_v45 = vld [vmem:[%s6228_s7 + $0x2f8] sm:$0xff] }
 0x701   : > { %4501 = vmatprep.subr.mxu1 %v4800_v54  ;;  %4483 = vmatpush3.msra.mxu0 %v3768_v46  ;;  %v3842_v46 = vld [vmem:[%s6228_s7 + $0x2c0] sm:$0xff] }
 0x702   : > { %4502 = vmatpush3.msra.mxu1 %v3776_v47  ;;  %4484 = vmatprep.subr.mxu0 %v4800_v54  ;;  %v3850_v47 = vld [vmem:[%s6228_s7 + $0x2f0] sm:$0xff] }
 0x703   : > { %4503 = vmatprep.subr.mxu1 %v4800_v54  ;;  %4485 = vmatpush3.msra.mxu0 %v3767_v48  ;;  %v3841_v48 = vld [vmem:[%s6228_s7 + $0x2b8] sm:$0xff] }
 0x704   : > { %4504 = vmatpush3.msra.mxu1 %v3775_v49  ;;  %4505 = vmatprep.mubr.msk.f32.mxu1 %vm4801_vm5, %v4800_v54  ;;  %v3849_v49 = vld [vmem:[%s6228_s7 + $0x2e8] sm:$0xff] }
 0x705   : > { %4486 = vmatprep.subr.mxu0 %v4800_v54  ;;  %4506 = vmatmul.mubr.msk.f32.vlgmr.msra.gmra.mxu1 %vm1972_vm6, %v2387_v50  ;;  %v3840_v50 = vld [vmem:[%s6228_s7 + $0x2b0] sm:$0xff] }
 0x706   : > { %4525 = vmatprep.subr.mxu1 %v4800_v54  ;;  %4487 = vmatpush3.msra.mxu0 %v3766_v51  ;;  %v3848_v51 = vld [vmem:[%s6228_s7 + $0x2e0] sm:$0xff] }
 0x707   : > { %4488 = vmatprep.mubr.msk.f32.mxu0 %vm4801_vm5, %v4800_v54  ;;  %4526 = vmatpush3.msk.msra.mxu1 %vm1975_vm4, %v3799_v52  ;;  %v3839_v52 = vld [vmem:[%s6228_s7 + $0x2a8] sm:$0xff] }
 0x708   : > { %4489 = vmatmul.mubr.msk.f32.vlgmr.msra.gmra.mxu0 %vm1972_vm6, %v2302_v53  ;;  %4508 = vmatprep.subr.mxu0 %v4800_v54  ;;  %v3847_v53 = vld [vmem:[%s6228_s7 + $0x2d8] sm:$0xff] }
 0x709   : > { %4527 = vmatprep.subr.mxu1 %v4800_v54  ;;  %4509 = vmatpush3.msk.msra.mxu0 %vm1975_vm4, %v3790_v55  ;;  %v3067_v55 = vrot.slane %v5931_v20, 5 }
 0x70a   : > { %4528 = vmatpush3.msra.mxu1 %v3798_v57  ;;  %4510 = vmatprep.subr.mxu0 %v4800_v54  ;;  %v3838_v57 = vld [vmem:[%s6228_s7 + $0x2a0] sm:$0xff] }
 0x70b   : > { %4529 = vmatprep.subr.mxu1 %v4800_v54  ;;  %4511 = vmatpush3.msra.mxu0 %v3789_v58  ;;  %v3871_v58 = vld [vmem:[%s6228_s7 + $0x378] sm:$0x1] }
 0x70c   : > { %4530 = vmatpush3.msra.mxu1 %v3797_v59  ;;  %4512 = vmatprep.subr.mxu0 %v4800_v54  ;;  %v2982_v59 = vrot.slane %v5931_v20, 4 }
 0x70d   : > { %4531 = vmatprep.subr.mxu1 %v4800_v54  ;;  %4513 = vmatpush3.msra.mxu0 %v3788_v60  ;;  %v3862_v60 = vld [vmem:[%s6228_s7 + $0x340] sm:$0x1] }
 0x70e   : > { %4532 = vmatpush3.msra.mxu1 %v3796_v61  ;;  %4514 = vmatprep.subr.mxu0 %v4800_v54  ;;  %v3870_v61 = vld [vmem:[%s6228_s7 + $0x370] sm:$0xff] }
 0x70f   : > { %4533 = vmatprep.subr.mxu1 %v4800_v54  ;;  %4515 = vmatpush3.msra.mxu0 %v3787_v63  ;;  %v3861_v63 = vld [vmem:[%s6228_s7 + $0x338] sm:$0xff] }
 0x710   : > { %4534 = vmatpush3.msra.mxu1 %v3795_v0  ;;  %4516 = vmatprep.subr.mxu0 %v4800_v54  ;;  %v3869_v0 = vld [vmem:[%s6228_s7 + $0x368] sm:$0xff] }
 0x711   : > { %4535 = vmatprep.subr.mxu1 %v4800_v54  ;;  %4517 = vmatpush3.msra.mxu0 %v3786_v1  ;;  %v3860_v1 = vld [vmem:[%s6228_s7 + $0x330] sm:$0xff] }
 0x712   : > { %4536 = vmatpush3.msra.mxu1 %v3794_v2  ;;  %4518 = vmatprep.subr.mxu0 %v4800_v54  ;;  %v3868_v2 = vld [vmem:[%s6228_s7 + $0x360] sm:$0xff] }
 0x713   : > { %4537 = vmatprep.subr.mxu1 %v4800_v54  ;;  %4519 = vmatpush3.msra.mxu0 %v3785_v3  ;;  %v3859_v3 = vld [vmem:[%s6228_s7 + $0x328] sm:$0xff] }
 0x714   : > { %4538 = vmatpush3.msra.mxu1 %v3793_v4  ;;  %4539 = vmatprep.mubr.msk.f32.mxu1 %vm4801_vm5, %v4800_v54  ;;  %v3867_v4 = vld [vmem:[%s6228_s7 + $0x358] sm:$0xff] }
 0x715   : > { %4520 = vmatprep.subr.mxu0 %v4800_v54  ;;  %4540 = vmatmul.mubr.msk.f32.vlgmr.msra.gmra.mxu1 %vm1972_vm6, %v2557_v5  ;;  %v3858_v5 = vld [vmem:[%s6228_s7 + $0x320] sm:$0xff] }
 0x716   : > { %4559 = vmatprep.subr.mxu1 %v4800_v54  ;;  %4521 = vmatpush3.msra.mxu0 %v3784_v6  ;;  %v3866_v6 = vld [vmem:[%s6228_s7 + $0x350] sm:$0xff] }
 0x717   : > { %4522 = vmatprep.mubr.msk.f32.mxu0 %vm4801_vm5, %v4800_v54  ;;  %4560 = vmatpush3.msk.msra.mxu1 %vm1975_vm4, %v3817_v7  ;;  %v3857_v7 = vld [vmem:[%s6228_s7 + $0x318] sm:$0xff] }
 0x718   : > { %4523 = vmatmul.mubr.msk.f32.vlgmr.msra.gmra.mxu0 %vm1972_vm6, %v2472_v8  ;;  %4542 = vmatprep.subr.mxu0 %v4800_v54  ;;  %v3865_v8 = vld [vmem:[%s6228_s7 + $0x348] sm:$0xff] }
 0x719   : > { %4561 = vmatprep.subr.mxu1 %v4800_v54  ;;  %4543 = vmatpush3.msk.msra.mxu0 %vm1975_vm4, %v3808_v9  ;;  %v3237_v9 = vrot.slane %v5931_v20, 7 }
 0x71a   : > { %4562 = vmatpush3.msra.mxu1 %v3816_v11  ;;  %4544 = vmatprep.subr.mxu0 %v4800_v54  ;;  %v3152_v11 = vrot.slane %v5931_v20, 6 }
 0x71b   : > { %4563 = vmatprep.subr.mxu1 %v4800_v54  ;;  %4545 = vmatpush3.msra.mxu0 %v3807_v13  ;;  %v3317_v13 = vld [vmem:[%s6230_s9] sm:$0xff] }
 0x71c   : > { %4564 = vmatpush3.msra.mxu1 %v3815_v62  ;;  %4546 = vmatprep.subr.mxu0 %v4800_v54  ;;  %v3394_v62 = vld [vmem:[%s6232_s11 + $0x8] sm:$0xff] }
 0x71d   : > { %4565 = vmatprep.subr.mxu1 %v4800_v54  ;;  %4547 = vmatpush3.msra.mxu0 %v3806_v14  ;;  %v3393_v14 = vld [vmem:[%s6232_s11] sm:$0xff] }
 0x71e   : > { %4566 = vmatpush3.msra.mxu1 %v3814_v16  ;;  %4548 = vmatprep.subr.mxu0 %v4800_v54 }
 0x71f   : > { %4567 = vmatprep.subr.mxu1 %v4800_v54  ;;  %4549 = vmatpush3.msra.mxu0 %v3805_v17 }
 0x720   : > { %4568 = vmatpush3.msra.mxu1 %v3813_v18  ;;  %4550 = vmatprep.subr.mxu0 %v4800_v54 }
 0x721   : > { %4569 = vmatprep.subr.mxu1 %v4800_v54  ;;  %4551 = vmatpush3.msra.mxu0 %v3804_v19 }
 0x722   : > { %4570 = vmatpush3.msra.mxu1 %v3812_v21  ;;  %4552 = vmatprep.subr.mxu0 %v4800_v54 }
 0x723   : > { %4571 = vmatprep.subr.mxu1 %v4800_v54  ;;  %4553 = vmatpush3.msra.mxu0 %v3803_v22 }
 0x724   : > { %4572 = vmatpush3.msra.mxu1 %v3811_v23  ;;  %4573 = vmatprep.mubr.msk.f32.mxu1 %vm4801_vm5, %v4800_v54 }
 0x725   : > { %4554 = vmatprep.subr.mxu0 %v4800_v54  ;;  %4574 = vmatmul.mubr.msk.f32.vlgmr.msra.gmra.mxu1 %vm1972_vm6, %v2727_v24 }
 0x726   : > { %4593 = vmatprep.subr.mxu1 %v4800_v54  ;;  %4555 = vmatpush3.msra.mxu0 %v3802_v25 }
 0x727   : > { %4556 = vmatprep.mubr.msk.f32.mxu0 %vm4801_vm5, %v4800_v54  ;;  %4594 = vmatpush3.msk.msra.mxu1 %vm1975_vm4, %v3835_v26 }
 0x728   : > { %4557 = vmatmul.mubr.msk.f32.vlgmr.msra.gmra.mxu0 %vm1972_vm6, %v5931_v20  ;;  %4576 = vmatprep.subr.mxu0 %v4800_v54 }
 0x729   : > { %4595 = vmatprep.subr.mxu1 %v4800_v54  ;;  %4577 = vmatpush3.msk.msra.mxu0 %vm1975_vm4, %v3826_v27 }
 0x72a   : > { %4596 = vmatpush3.msra.mxu1 %v3834_v56  ;;  %4578 = vmatprep.subr.mxu0 %v4800_v54 }
 0x72b   : > { %4597 = vmatprep.subr.mxu1 %v4800_v54  ;;  %4579 = vmatpush3.msra.mxu0 %v3825_v28 }
 0x72c   : > { %4598 = vmatpush3.msra.mxu1 %v3833_v29  ;;  %4580 = vmatprep.subr.mxu0 %v4800_v54 }
 0x72d   : > { %4599 = vmatprep.subr.mxu1 %v4800_v54  ;;  %4581 = vmatpush3.msra.mxu0 %v3824_v30 }
 0x72e   : > { %4600 = vmatpush3.msra.mxu1 %v3832_v31  ;;  %4582 = vmatprep.subr.mxu0 %v4800_v54 }
 0x72f   : > { %4601 = vmatprep.subr.mxu1 %v4800_v54  ;;  %4583 = vmatpush3.msra.mxu0 %v3823_v32 }
 0x730   : > { %4602 = vmatpush3.msra.mxu1 %v3831_v33  ;;  %4584 = vmatprep.subr.mxu0 %v4800_v54 }
 0x731   : > { %4603 = vmatprep.subr.mxu1 %v4800_v54  ;;  %4585 = vmatpush3.msra.mxu0 %v3822_v34 }
 0x732   : > { %4604 = vmatpush3.msra.mxu1 %v3830_v35  ;;  %4586 = vmatprep.subr.mxu0 %v4800_v54 }
 0x733   : > { %4605 = vmatprep.subr.mxu1 %v4800_v54  ;;  %4587 = vmatpush3.msra.mxu0 %v3821_v36 }
 0x734   : > { %4606 = vmatpush3.msra.mxu1 %v3829_v37  ;;  %4607 = vmatprep.mubr.msk.f32.mxu1 %vm4801_vm5, %v4800_v54 }
 0x735   : > { %4588 = vmatprep.subr.mxu0 %v4800_v54  ;;  %4608 = vmatmul.mubr.msk.f32.vlgmr.msra.gmra.mxu1 %vm1972_vm6, %v2897_v38 }
 0x736   : > { %4627 = vmatprep.subr.mxu1 %v4800_v54  ;;  %4589 = vmatpush3.msra.mxu0 %v3820_v39 }
 0x737   : > { %4590 = vmatprep.mubr.msk.f32.mxu0 %vm4801_vm5, %v4800_v54  ;;  %4628 = vmatpush3.msk.msra.mxu1 %vm1975_vm4, %v3853_v40 }
 0x738   : > { %4591 = vmatmul.mubr.msk.f32.vlgmr.msra.gmra.mxu0 %vm1972_vm6, %v2812_v41  ;;  %4610 = vmatprep.subr.mxu0 %v4800_v54 }
 0x739   : > { %4629 = vmatprep.subr.mxu1 %v4800_v54  ;;  %4611 = vmatpush3.msk.msra.mxu0 %vm1975_vm4, %v3844_v42 }
 0x73a   : > { %4630 = vmatpush3.msra.mxu1 %v3852_v43  ;;  %4612 = vmatprep.subr.mxu0 %v4800_v54 }
 0x73b   : > { %4631 = vmatprep.subr.mxu1 %v4800_v54  ;;  %4613 = vmatpush3.msra.mxu0 %v3843_v44 }
 0x73c   : > { %4632 = vmatpush3.msra.mxu1 %v3851_v45  ;;  %4614 = vmatprep.subr.mxu0 %v4800_v54 }
 0x73d   : > { %4633 = vmatprep.subr.mxu1 %v4800_v54  ;;  %4615 = vmatpush3.msra.mxu0 %v3842_v46 }
 0x73e   : > { %4634 = vmatpush3.msra.mxu1 %v3850_v47  ;;  %4616 = vmatprep.subr.mxu0 %v4800_v54 }
 0x73f   : > { %4635 = vmatprep.subr.mxu1 %v4800_v54  ;;  %4617 = vmatpush3.msra.mxu0 %v3841_v48 }
 0x740   : > { %4636 = vmatpush3.msra.mxu1 %v3849_v49  ;;  %4618 = vmatprep.subr.mxu0 %v4800_v54 }
 0x741   : > { %4637 = vmatprep.subr.mxu1 %v4800_v54  ;;  %4619 = vmatpush3.msra.mxu0 %v3840_v50 }
 0x742   : > { %4638 = vmatpush3.msra.mxu1 %v3848_v51  ;;  %4620 = vmatprep.subr.mxu0 %v4800_v54 }
 0x743   : > { %4639 = vmatprep.subr.mxu1 %v4800_v54  ;;  %4621 = vmatpush3.msra.mxu0 %v3839_v52 }
 0x744   : > { %4640 = vmatpush3.msra.mxu1 %v3847_v53  ;;  %4641 = vmatprep.mubr.msk.f32.mxu1 %vm4801_vm5, %v4800_v54 }
 0x745   : > { %4622 = vmatprep.subr.mxu0 %v4800_v54  ;;  %4642 = vmatmul.mubr.msk.f32.vlgmr.msra.gmra.mxu1 %vm1972_vm6, %v3067_v55 }
 0x746   : > { %4661 = vmatprep.subr.mxu1 %v4800_v54  ;;  %4623 = vmatpush3.msra.mxu0 %v3838_v57 }
 0x747   : > { %4624 = vmatprep.mubr.msk.f32.mxu0 %vm4801_vm5, %v4800_v54  ;;  %4662 = vmatpush3.msk.msra.mxu1 %vm1975_vm4, %v3871_v58 }
 0x748   : > { %4625 = vmatmul.mubr.msk.f32.vlgmr.msra.gmra.mxu0 %vm1972_vm6, %v2982_v59  ;;  %4644 = vmatprep.subr.mxu0 %v4800_v54 }
 0x749   : > { %4663 = vmatprep.subr.mxu1 %v4800_v54  ;;  %4645 = vmatpush3.msk.msra.mxu0 %vm1975_vm4, %v3862_v60 }
 0x74a   : > { %4664 = vmatpush3.msra.mxu1 %v3870_v61  ;;  %4646 = vmatprep.subr.mxu0 %v4800_v54  ;;  %v3314_v61 = vld [vmem:[%s6229_s8] sm:$0x1] }
 0x74b   : > { %4665 = vmatprep.subr.mxu1 %v4800_v54  ;;  %4647 = vmatpush3.msra.mxu0 %v3861_v63 }
 0x74c   : > { %4666 = vmatpush3.msra.mxu1 %v3869_v0  ;;  %4648 = vmatprep.subr.mxu0 %v4800_v54 }
 0x74d   : > { %4667 = vmatprep.subr.mxu1 %v4800_v54  ;;  %4649 = vmatpush3.msra.mxu0 %v3860_v1 }
 0x74e   : > { %4668 = vmatpush3.msra.mxu1 %v3868_v2  ;;  %4650 = vmatprep.subr.mxu0 %v4800_v54 }
 0x74f   : > { %4669 = vmatprep.subr.mxu1 %v4800_v54  ;;  %4651 = vmatpush3.msra.mxu0 %v3859_v3  ;;  %v3319_v3 = vld [vmem:[%s6231_s10] sm:$0x1] }
 0x750   : > { %4670 = vmatpush3.msra.mxu1 %v3867_v4  ;;  %4652 = vmatprep.subr.mxu0 %v4800_v54 }
 0x751   : > { %4671 = vmatprep.subr.mxu1 %v4800_v54  ;;  %4653 = vmatpush3.msra.mxu0 %v3858_v5 }
 0x752   : > { %4672 = vmatpush3.msra.mxu1 %v3866_v6  ;;  %4654 = vmatprep.subr.mxu0 %v4800_v54 }
 0x753   : > { %4673 = vmatprep.subr.mxu1 %v4800_v54  ;;  %4655 = vmatpush3.msra.mxu0 %v3857_v7 }
 0x754   : > { %4674 = vmatpush3.msra.mxu1 %v3865_v8  ;;  %4675 = vmatprep.mubr.msk.f32.mxu1 %vm4801_vm5, %v4800_v54  ;;  %v3395_v8 = vld [vmem:[#allocation2] sm:$0x1] }
 0x755   : > { %4656 = vmatprep.subr.mxu0 %v4800_v54  ;;  %4676 = vmatmul.mubr.msk.f32.vlgmr.msra.gmra.mxu1 %vm1972_vm6, %v3237_v9 }
 0x756   : > { %4657 = vmatpush3.msra.mxu0 %v3856_v10  ;;  %4658 = vmatprep.mubr.msk.f32.mxu0 %vm4801_vm5, %v4800_v54 }
 0x757   : > { %4659 = vmatmul.mubr.msk.f32.vlgmr.msra.gmra.mxu0 %vm1972_vm6, %v3152_v11  ;;  %4678 = vmatprep.subr.mxu0 %v4800_v54 }
 0x758   : > { %4682 = vmatprep.mubr.msk.f32.mxu0 %vm4801_vm5, %v4800_v54  ;;  %4685 = vmatprep.subr.mxu1 %v4800_v54 }
 0x759   : > { %4689 = vmatprep.mubr.msk.f32.mxu1 %vm4801_vm5, %v4800_v54  ;;  %4679 = vmatpush3.msra.mxu0 %v3318_v12 }
 0x75a   : > { %4680 = vmatprep.subr.mxu0 %v4800_v54  ;;  %4686 = vmatpush3.msra.mxu1 %v3394_v62 }
 0x75b   : > { %4681 = vmatpush3.msra.mxu0 %v3317_v13  ;;  %4687 = vmatprep.subr.mxu1 %v4800_v54 }
 0x75c   : > { %4688 = vmatpush3.msra.mxu1 %v3393_v14 }
 0x7a7   : > { %v2120_v15 = vpop.f32.mrf.mxu1 }
 0x7a9   : > { %v2045_v16 = vpop.f32.mrf.mxu0  ;;  %v4439_v17 = vpop.f32.mrf.mxu1 }
 0x7aa   : > { %v2121_v18 = vadd.f32 %v2120_v15, %v2045_v16 }
 0x7ab   : > { %v4422_v19 = vpop.f32.mrf.mxu0 }
 0x7b5   : > { %v2289_v20 = vpop.f32.mrf.mxu1 }
 0x7b7   : > { %v4473_v21 = vpop.f32.mrf.mxu1 }
 0x7b8   : > { %v2204_v22 = vpop.f32.mrf.mxu0 }
 0x7b9   : > { %v2208_v23 = vadd.f32 %v2204_v22, %v2121_v18 }
 0x7ba   : > { %v4456_v24 = vpop.f32.mrf.mxu0 }
 0x7bb   : > { %v2293_v25 = vadd.f32 %v2289_v20, %v2208_v23 }
 0x7c5   : > { %v2459_v26 = vpop.f32.mrf.mxu1 }
 0x7c7   : > { %v4507_v27 = vpop.f32.mrf.mxu1 }
 0x7c8   : > { %v2374_v56 = vpop.f32.mrf.mxu0 }
 0x7c9   : > { %v2378_v28 = vadd.f32 %v2374_v56, %v2293_v25 }
 0x7ca   : > { %v4490_v29 = vpop.f32.mrf.mxu0 }
 0x7cb   : > { %v2463_v30 = vadd.f32 %v2459_v26, %v2378_v28 }
 0x7d5   : > { %v2629_v31 = vpop.f32.mrf.mxu1 }
 0x7d7   : > { %v4541_v54 = vpop.f32.mrf.mxu1 }
 0x7d8   : > { %v2544_v32 = vpop.f32.mrf.mxu0 }
 0x7d9   : > { %v2548_v42 = vadd.f32 %v2544_v32, %v2463_v30 }
 0x7da   : > { %v4524_v33 = vpop.f32.mrf.mxu0 }
 0x7db   : > { %v2633_v43 = vadd.f32 %v2629_v31, %v2548_v42 }
 0x7e5   : > { %v2799_v34 = vpop.f32.mrf.mxu1 }
 0x7e7   : > { %v4575_v35 = vpop.f32.mrf.mxu1 }
 0x7e8   : > { %v2714_v36 = vpop.f32.mrf.mxu0 }
 0x7e9   : > { %v2718_v45 = vadd.f32 %v2714_v36, %v2633_v43 }
 0x7ea   : > { %v4558_v37 = vpop.f32.mrf.mxu0 }
 0x7eb   : > { %v2803_v48 = vadd.f32 %v2799_v34, %v2718_v45 }
 0x7f5   : > { %v2969_v38 = vpop.f32.mrf.mxu1 }
 0x7f7   : > { %v4609_v39 = vpop.f32.mrf.mxu1 }
 0x7f8   : > { %v2884_v40 = vpop.f32.mrf.mxu0 }
 0x7f9   : > { %v2888_v50 = vadd.f32 %v2884_v40, %v2803_v48 }
 0x7fa   : > { %v4592_v41 = vpop.f32.mrf.mxu0 }
 0x7fb   : > { %v2973_v51 = vadd.f32 %v2969_v38, %v2888_v50 }
 0x805   : > { %v3139_v44 = vpop.f32.mrf.mxu1 }
 0x807   : > { %v4643_v46 = vpop.f32.mrf.mxu1 }
 0x808   : > { %v3054_v47 = vpop.f32.mrf.mxu0 }
 0x809   : > { %v3058_v52 = vadd.f32 %v3054_v47, %v2973_v51 }
 0x80a   : > { %v4626_v49 = vpop.f32.mrf.mxu0 }
 0x80b   : > { %v3143_v55 = vadd.f32 %v3139_v44, %v3058_v52 }
 0x815   : > { %v3309_v53 = vpop.f32.mrf.mxu1 }
 0x817   : > { %v3224_v57 = vpop.f32.mrf.mxu0  ;;  %v4677_v58 = vpop.f32.mrf.mxu1 }
 0x818   : > { %v3228_v59 = vadd.f32 %v3224_v57, %v3143_v55 }
 0x819   : > { %v4660_v60 = vpop.f32.mrf.mxu0 }
 0x81a   : > { %v3313_v63 = vadd.f32 %v3309_v53, %v3228_v59 }
 0x81c   : > { %v3315_v0 = vadd.f32 %v3314_v61, %v3313_v63 }
 0x81e   : > { %v3316_v1 = vmax.f32 %v3315_v0, 0.0 }
 0x820   : > { %3396 = vrot.lane.b32.xlu0 %v3316_v1, %s4802_s16  ;;  %4683 = vmatmul.mubr.msk.f32.vlgmr.msra.gmra.mxu0 %vm1420_vm3, %v3316_v1  ;;  %s4803_s16 = smov [#allocation3]  }
 0x821   : > { %s4741_s12 = sshll.u32 %s4803_s16, 4  ;;  %s4742_s12 = int_to_ptr.vmem [resolvable:$false] %s4741_s12 }
 0x822   : > { %s4743_s18 = scalar_lea.vmem %s4742_s12, 32  ;;  %p4744_p0 = scmp.lt.s32.totalorder %s3498_s23, %s4742_s12 }
 0x823   : > { %p4745_p1 = scmp.lt.s32.totalorder %s4743_s18, %s4737_s26 }
 0x825   : > { %p4746_p2 = por %p4745_p1, %p4744_p0 }
 0x827   : > { %p4747_p3 = pnand %p4746_p2, %p4740_p13 }
 0x892   : > { %v3397_v2 = vpop.permute.xlu0 %3396 }
 0x893   : > { %4690 = vmatmul.mubr.msk.f32.vlgmr.msra.gmra.mxu1 %vm1420_vm3, %v3397_v2 }
 0x8e0   : > { %v3389_v4 = vpop.f32.mrf.mxu0 }
 0x8e1   : > { %v3390_v5 = vadd.f32 %v3389_v4, %v3319_v3 }
 0x8e2   : > { %v4684_v6 = vpop.f32.mrf.mxu0 }
 0x8e3   : > { %v3477_v7 = vsel %vm3476_vm7, %v3390_v5, 0.0 }
 0x8e4   : > { %3478 = vadd.xlane.f32.xlu1 %v3477_v7 }
 0x953   : > { %v3466_v9 = vpop.f32.mrf.mxu1 }
 0x954   : > { %v3467_v10 = vadd.f32 %v3466_v9, %v3395_v8 }
 0x955   : > { %v4691_v11 = vpop.f32.mrf.mxu1 }
 0x956   : > { %3472 = vperm.xlu0 %4735, %v3467_v10  }
 0x96d   : > { %v3479_v12 = vpop.xlane.xlu1 %3478 }
 0x96e   : > { %v3481_v62 = vmul.f32 0.25, %v3479_v12 }
 0x9d1   : > { %v3473_v13 = vpop.permute.xlu0 %3472 }
 0x9d2   : > { %v3475_v14 = vadd.f32 %v3473_v13, %v3390_v5 }
 0x9d4   : > { %v3482_v15 = vsub.f32 %v3475_v14, %v3481_v62 }
 0x9d6   : > { %3483 = vst.msk [vmem:[%s434_s14] sm:$0x1] %vm3476_vm7, %v3482_v15 }
 0x9d7   : > { %4750 = shalt.err (!%p4747_p3)
}
 0x9d8   : > { %s4751_s17 = scalar_lea.hbm %s3495_s24, 16  ;;  %s4755_s14 = scalar_lea.hbm %s6234_s13, 32 }
 0x9d9   : > { %p4752_p4 = scmp.ne.s32.totalorder %s3495_s24, %s4751_s17  ;;  %p4756_p9 = scmp.lt.s32.totalorder %s3495_s24, %s6234_s13 }
 0x9da   : > { %p4757_p10 = scmp.lt.s32.totalorder %s4755_s14, %s4751_s17 }
 0x9db   : > { %p4753_p7 = pnand %p4752_p4, %p4915_p5 }
 0x9dc   : > { %p4758_p11 = por %p4757_p10, %p4756_p9 }
 0x9dd   : > { %p4754_p8 = pneg %p4753_p7 }
 0x9df   : > { %p4759_p12 = pnand %p4758_p11, %p4754_p8 }
 0x9e1   : > { %4762 = shalt.err (!%p4759_p12)
}
 0x9e2   : > { %4692 = dma.vmem_to_hbm [thread:$0]  (%p4915_p5), %s3498_s23, 16, %s3495_s24, %s3485_s15  }
 0x9e3 PF: > { %p4698_p13 = scmp.ge.s32.totalorder %s4797_s30, 2  ;;  %s3509_s26 = sand.u32 1, %s4785_s27  }
 0x9e4   : > { %s3510_s16 = scalar_lea.sflag [#allocation4], %s3509_s26 }
 0x9e5   : > { %p4695_p0 = pnand %p4698_p13, %p4919_p6 }
 0x9e7   : > { %p4696_p1 = pneg %p4695_p0 }
 0x9e9   : > { %4780 = dma.done.wait (%p4696_p1), %s3510_s16, 16  }
 0x9ea   : > { %4782 = vsyncadd (%p4696_p1), %s3510_s16, 4294967280  ;;  %s6243_s30 = sld [smem:[#allocation7_spill]]  ;;  %s6246_s27 = smov %s4789_s28 }
 0x9eb   : > { %s6244_s12 = sld [smem:[#allocation6_spill]] }
 0x9ec   : > { %s6245_s29 = sld [smem:[#allocation8_spill]] }
 0x9f0   : > { %p25_p2 = scmp.ge.s32.totalorder %s6243_s30, 4  }
 0x9f1   : > { %s6247_s28 = smov %s6244_s12 }
 0x9f2   :  { %27 = sbr.rel (!%p25_p2) target bundleno = 6 (0x6), region = 134 }
 0x9f7   :  { %3514 = vsyncpa [#allocation4], 1 }
 0x9f8   :  { %3516 = vsyncpa [#allocation4 + $0x1], 1 }

</bundles_post_ra>
